<compile_context>
chip_gen: v5e
topology: v5e:2x2
jax: 0.10.0
libtpu: 0.0.40
codegen_flags: <defaults>
</compile_context>

<pallas_src>
import functools

import jax
import jax.numpy as jnp
from jax.experimental import pallas as pl
from jax.experimental.pallas import tpu as pltpu


# ----------------------------------------------------------------------------- utils
def _round_up(n, m):
    return ((n + m - 1) // m) * m


def _pad2(x, rows, cols):
    r, c = x.shape
    if r == rows and c == cols:
        return x
    return jnp.pad(x, ((0, rows - r), (0, cols - c)))


_VMEM_LIMIT = 64 * 1024 * 1024  # fits v7x (64 MiB) and below; plenty of headroom here


# ----------------------------------------------------------------------------- kernels
def _matmul_kernel(x_ref, w_ref, o_ref, acc_ref):
    """Tiled matmul: grid (M/tm, N/tn, K/tk), f32 accumulator."""
    @pl.when(pl.program_id(2) == 0)
    def _():
        acc_ref[...] = jnp.zeros_like(acc_ref)

    acc_ref[...] += jnp.dot(x_ref[...], w_ref[...], preferred_element_type=jnp.float32)

    @pl.when(pl.program_id(2) == pl.num_programs(2) - 1)
    def _():
        o_ref[...] = acc_ref[...].astype(o_ref.dtype)


def _matmul_residual_kernel(x_ref, w_ref, res_ref, o_ref, acc_ref):
    """Tiled matmul with the residual add fused into the epilogue."""
    @pl.when(pl.program_id(2) == 0)
    def _():
        acc_ref[...] = jnp.zeros_like(acc_ref)

    acc_ref[...] += jnp.dot(x_ref[...], w_ref[...], preferred_element_type=jnp.float32)

    @pl.when(pl.program_id(2) == pl.num_programs(2) - 1)
    def _():
        o_ref[...] = (acc_ref[...] + res_ref[...].astype(jnp.float32)).astype(o_ref.dtype)


def _rmsnorm_kernel(x_ref, g_ref, o_ref, *, eps):
    """Standalone RMSNorm (used for final_layernorm / mtp_norms)."""
    x = x_ref[...].astype(jnp.float32)
    var = jnp.mean(x * x, axis=-1, keepdims=True)
    xn = (x * jax.lax.rsqrt(var + eps)).astype(x_ref.dtype)  # downcast, then * weight
    o_ref[...] = (g_ref[...] * xn).astype(o_ref.dtype)


def _rms_matmul_kernel(x_ref, g_ref, w_ref, o_ref, *, eps):
    """RMSNorm fused into the matmul prologue (K = d_model kept un-tiled)."""
    x = x_ref[...].astype(jnp.float32)
    var = jnp.mean(x * x, axis=-1, keepdims=True)
    xn = (x * jax.lax.rsqrt(var + eps)).astype(x_ref.dtype) * g_ref[...]
    o_ref[...] = jnp.dot(xn, w_ref[...], preferred_element_type=jnp.float32).astype(
        o_ref.dtype
    )


def _rms_mlp_kernel(x_ref, g_ref, wg_ref, wu_ref, wd_ref, res_ref, o_ref,
                    acc_ref, xn_ref, *, eps):
    """post_attention_layernorm + gated MLP + residual, tiled over intermediate dim."""
    @pl.when(pl.program_id(1) == 0)
    def _():
        x = x_ref[...].astype(jnp.float32)
        var = jnp.mean(x * x, axis=-1, keepdims=True)
        xn_ref[...] = (x * jax.lax.rsqrt(var + eps)).astype(xn_ref.dtype) * g_ref[...]
        acc_ref[...] = jnp.zeros_like(acc_ref)

    xn = xn_ref[...]
    g = jnp.dot(xn, wg_ref[...], preferred_element_type=jnp.float32)
    u = jnp.dot(xn, wu_ref[...], preferred_element_type=jnp.float32)
    h = (jax.nn.silu(g) * u).astype(wd_ref.dtype)
    acc_ref[...] += jnp.dot(h, wd_ref[...], preferred_element_type=jnp.float32)

    @pl.when(pl.program_id(1) == pl.num_programs(1) - 1)
    def _():
        o_ref[...] = (acc_ref[...] + res_ref[...].astype(jnp.float32)).astype(o_ref.dtype)


def _mamba_core_kernel(zxbcdt_ref, convw_ref, convb_ref, zbias_ref, dskip_ref, o_ref,
                       *, L, K, d_inner, n_qk_heads, n_v_heads, d_state, headdim):
    """DiscreteMamba2 core for one batch element (grid axis = batch, 'parallel').

    zxbcdt layout (last dim): [z (d_inner) | x (d_inner) | B (Hq*N) | C (Hq*N) | A_log (Hv)]
    """
    Hq, Hv, N, P = n_qk_heads, n_v_heads, d_state, headdim
    conv_dim = d_inner + 2 * Hq * N

    # --- static ref slices (no HBM splitting in the wrapper) ---------------------
    xbc = zxbcdt_ref[0, :, d_inner:d_inner + conv_dim].astype(jnp.float32)   # (L, C)
    a_log = zxbcdt_ref[0, :, d_inner + conv_dim:d_inner + conv_dim + Hv].astype(
        jnp.float32
    )                                                                         # (L, Hv)

    # --- causal depthwise conv1d via rolls + masking (identity activation) -------
    w = convw_ref[...].astype(jnp.float32)                                    # (K, C)
    row = jax.lax.broadcasted_iota(jnp.int32, (L, conv_dim), 0)
    xconv = jnp.broadcast_to(convb_ref[...].astype(jnp.float32), (L, conv_dim))
    for j in range(K):  # tap j uses x[t - j] with weight w[K-1-j]
        if j == 0:
            sh = xbc
        else:
            sh = pltpu.roll(xbc, shift=j, axis=0)
            sh = jnp.where(row >= j, sh, 0.0)
        xconv = xconv + w[K - 1 - j][None, :] * sh

    # --- head-leading batched views (static lane slices) -------------------------
    xs, bs, cs = [], [], []
    for h in range(Hv):
        hq = (h * Hq) // Hv  # qk-head repeat when Hv > Hq
        xs.append(xconv[:, h * P:(h + 1) * P])
        bs.append(xconv[:, d_inner + hq * N:d_inner + (hq + 1) * N])
        cs.append(xconv[:, d_inner + Hq * N + hq * N:d_inner + Hq * N + (hq + 1) * N])
    xh = jnp.stack(xs, axis=0)  # (Hv, L, P)
    Bh = jnp.stack(bs, axis=0)  # (Hv, L, N)
    Ch = jnp.stack(cs, axis=0)  # (Hv, L, N)

    # --- decay: dt = softplus(A_log), a_t = exp(-dt_t)  (A = -1 per head) --------
    li = jax.lax.broadcasted_iota(jnp.int32, (L, L), 0)
    si = jax.lax.broadcasted_iota(jnp.int32, (L, L), 1)
    causal = (li >= si)
    tril = causal.astype(jnp.float32)

    dt = jax.nn.softplus(a_log)                                            # (L, Hv)
    cum = jnp.dot(tril, dt, preferred_element_type=jnp.float32)            # inclusive cumsum
    cumh = cum.T                                                           # (Hv, L)
    diff = cumh[:, :, None] - cumh[:, None, :]                             # (Hv, L, L)
    # mask BEFORE exp so the upper triangle never overflows
    G = jnp.exp(jnp.where(causal[None], -diff, -jnp.inf))                  # (Hv, L, L)

    CB = jnp.einsum("hln,hsn->hls", Ch, Bh, preferred_element_type=jnp.float32)
    y = jnp.einsum("hls,hsp->hlp", G * CB, xh, preferred_element_type=jnp.float32)

    # --- D skip + silu(z + z_bias) gating, store per head ------------------------
    zb = zbias_ref[...].astype(jnp.float32)                                # (1, d_inner)
    for h in range(Hv):
        yh = y[h] + dskip_ref[0, h] * xh[h]                                # D scalar from SMEM
        zh = zxbcdt_ref[0, :, h * P:(h + 1) * P].astype(jnp.float32) \
            + zb[:, h * P:(h + 1) * P]
        o_ref[0, :, h * P:(h + 1) * P] = (yh * jax.nn.silu(zh)).astype(o_ref.dtype)


# ----------------------------------------------------------------------------- wrappers
def linear(x, w, *, res=None, out_dtype=None, tm=256, tn=256, tk=512):
    """Tiled x @ w (+ optional fused residual add)."""
    M, K = x.shape
    _, N = w.shape
    out_dtype = out_dtype if out_dtype is not None else x.dtype
    tm = min(tm, _round_up(M, 8))
    tn = min(tn, _round_up(N, 128))
    tk = min(tk, _round_up(K, 128))
    Mp, Np, Kp = _round_up(M, tm), _round_up(N, tn), _round_up(K, tk)

    args = [_pad2(x, Mp, Kp), _pad2(w, Kp, Np)]
    in_specs = [
        pl.BlockSpec((tm, tk), lambda i, j, k: (i, k)),
        pl.BlockSpec((tk, tn), lambda i, j, k: (k, j)),
    ]
    if res is not None:
        args.append(_pad2(res, Mp, Np))
        in_specs.append(pl.BlockSpec((tm, tn), lambda i, j, k: (i, j)))
        kernel = _matmul_residual_kernel
    else:
        kernel = _matmul_kernel

    out = pl.pallas_call(
        kernel,
        grid=(Mp // tm, Np // tn, Kp // tk),
        in_specs=in_specs,
        out_specs=pl.BlockSpec((tm, tn), lambda i, j, k: (i, j)),
        out_shape=jax.ShapeDtypeStruct((Mp, Np), out_dtype),
        scratch_shapes=[pltpu.VMEM((tm, tn), jnp.float32)],
        compiler_params=pltpu.CompilerParams(
            dimension_semantics=("parallel", "parallel", "arbitrary"),
            vmem_limit_bytes=_VMEM_LIMIT),
    )(*args)
    return out[:M, :N] if (Mp, Np) != (M, N) else out


def rms_linear(x, gamma, w, *, eps, tm=256, tn=256):
    """RMSNorm(x) @ w  with the norm fused into the matmul prologue."""
    M, K = x.shape
    _, N = w.shape
    tm = min(tm, _round_up(M, 8))
    tn = min(tn, _round_up(N, 128))
    Mp, Np = _round_up(M, tm), _round_up(N, tn)

    out = pl.pallas_call(
        functools.partial(_rms_matmul_kernel, eps=eps),
        grid=(Mp // tm, Np // tn),
        in_specs=[
            pl.BlockSpec((tm, K), lambda i, j: (i, 0)),
            pl.BlockSpec((1, K), lambda i, j: (0, 0)),
            pl.BlockSpec((K, tn), lambda i, j: (0, j)),
        ],
        out_specs=pl.BlockSpec((tm, tn), lambda i, j: (i, j)),
        out_shape=jax.ShapeDtypeStruct((Mp, Np), x.dtype),
        compiler_params=pltpu.CompilerParams(
            dimension_semantics=("parallel", "parallel"),
            vmem_limit_bytes=_VMEM_LIMIT),
    )(_pad2(x, Mp, K), gamma.reshape(1, K), _pad2(w, K, Np))
    return out[:M, :N] if (Mp, Np) != (M, N) else out


def rms_mlp(x2d, gamma, p, res2d, *, eps, tm=256, ti=512):
    """post-norm + silu(x@Wg)*(x@Wu) @ Wd + residual, tiled over the intermediate dim."""
    M, D = x2d.shape
    I = p["gate_t"].shape[1]
    tm = min(tm, _round_up(M, 8))
    ti = min(ti, _round_up(I, 128))
    Mp, Ip = _round_up(M, tm), _round_up(I, ti)

    out = pl.pallas_call(
        functools.partial(_rms_mlp_kernel, eps=eps),
        grid=(Mp // tm, Ip // ti),
        in_specs=[
            pl.BlockSpec((tm, D), lambda i, j: (i, 0)),
            pl.BlockSpec((1, D), lambda i, j: (0, 0)),
            pl.BlockSpec((D, ti), lambda i, j: (0, j)),
            pl.BlockSpec((D, ti), lambda i, j: (0, j)),
            pl.BlockSpec((ti, D), lambda i, j: (j, 0)),
            pl.BlockSpec((tm, D), lambda i, j: (i, 0)),
        ],
        out_specs=pl.BlockSpec((tm, D), lambda i, j: (i, 0)),
        out_shape=jax.ShapeDtypeStruct((Mp, D), x2d.dtype),
        scratch_shapes=[pltpu.VMEM((tm, D), jnp.float32),
                        pltpu.VMEM((tm, D), x2d.dtype)],
        compiler_params=pltpu.CompilerParams(
            dimension_semantics=("parallel", "arbitrary"),
            vmem_limit_bytes=_VMEM_LIMIT),
    )(_pad2(x2d, Mp, D), gamma.reshape(1, D), _pad2(p["gate_t"], D, Ip),
      _pad2(p["up_t"], D, Ip), _pad2(p["down_t"], Ip, D), _pad2(res2d, Mp, D))
    return out[:M]


def rmsnorm(x3d, gamma, *, eps, tm=256):
    B, L, D = x3d.shape
    M = B * L
    tm = min(tm, _round_up(M, 8))
    Mp = _round_up(M, tm)
    out = pl.pallas_call(
        functools.partial(_rmsnorm_kernel, eps=eps),
        grid=(Mp // tm,),
        in_specs=[pl.BlockSpec((tm, D), lambda i: (i, 0)),
                  pl.BlockSpec((1, D), lambda i: (0, 0))],
        out_specs=pl.BlockSpec((tm, D), lambda i: (i, 0)),
        out_shape=jax.ShapeDtypeStruct((Mp, D), x3d.dtype),
        compiler_params=pltpu.CompilerParams(dimension_semantics=("parallel",),
                                             vmem_limit_bytes=_VMEM_LIMIT),
    )(_pad2(x3d.reshape(M, D), Mp, D), gamma.reshape(1, D))
    return out[:M].reshape(B, L, D)


def mamba_core(zxbcdt, p, cfg):
    """DiscreteMamba2 core: conv1d + SSM + D-skip + gating, bf16 output."""
    B, L, d_in_proj = zxbcdt.shape
    d_inner = cfg["d_inner"]
    kern = functools.partial(
        _mamba_core_kernel, L=L, K=cfg["d_conv"], d_inner=d_inner,
        n_qk_heads=cfg["n_qk_heads"], n_v_heads=cfg["n_v_heads"],
        d_state=cfg["d_state"], headdim=cfg["headdim"])
    return pl.pallas_call(
        kern,
        grid=(B,),
        in_specs=[
            pl.BlockSpec((1, L, d_in_proj), lambda b: (b, 0, 0)),
            pl.BlockSpec((cfg["d_conv"], cfg["conv_dim"]), lambda b: (0, 0)),
            pl.BlockSpec((1, cfg["conv_dim"]), lambda b: (0, 0)),
            pl.BlockSpec((1, d_inner), lambda b: (0, 0)),
            pl.BlockSpec(memory_space=pltpu.MemorySpace.SMEM),  # per-head D scalars
        ],
        out_specs=pl.BlockSpec((1, L, d_inner), lambda b: (b, 0, 0)),
        out_shape=jax.ShapeDtypeStruct((B, L, d_inner), jnp.bfloat16),
        compiler_params=pltpu.CompilerParams(dimension_semantics=("parallel",),
                                             vmem_limit_bytes=_VMEM_LIMIT),
    )(zxbcdt, p["conv_w"], p["conv_b"], p["z_bias"], p["D"])


# ----------------------------------------------------------------------------- model
def block_forward(h, p, cfg):
    B, L, D = h.shape
    res = h.reshape(B * L, D)
    # input_layernorm fused into mixer.in_proj; zxbcdt stays as one tensor
    zxbcdt = rms_linear(res, p["input_ln"], p["mixer"]["in_proj_t"], eps=1e-5)
    y_gated = mamba_core(zxbcdt.reshape(B, L, -1), p["mixer"], cfg)
    # mixer.out_proj with the residual add fused into its epilogue
    h1 = linear(y_gated.reshape(B * L, cfg["d_inner"]), p["mixer"]["out_proj_t"],
                res=res)
    # post_attention_layernorm + gated MLP + residual, fused
    h2 = rms_mlp(h1, p["post_ln"], p["mlp"], h1, eps=1e-5)
    return h2.reshape(B, L, D)


def mtp_llamba_forward(input_ids, params, cfg):
    h = jnp.take(params["embedding"], input_ids, axis=0)  # (B, L, D), glue
    hidden_before_last = h
    for i, lp in enumerate(params["layers"]):
        if i == cfg["n_layer"] - 1:
            hidden_before_last = h
        h = block_forward(h, lp, cfg)

    last_hidden = rmsnorm(h, params["final_ln"], eps=cfg["norm_epsilon"])

    latents = [last_hidden]
    for i, hp in enumerate(params["mtp_heads"]):
        mtp_h = block_forward(hidden_before_last, hp, cfg)
        latents.append(rmsnorm(mtp_h, params["mtp_norms"][i], eps=cfg["norm_epsilon"]))

    stacked = jnp.stack(latents, axis=-2)  # (B, L, prediction_heads, D)
    B, L, P, D = stacked.shape
    logits = linear(stacked.reshape(B * L * P, D), params["lm_head_t"],
                    out_dtype=jnp.float32)  # .float() per reference
    return logits.reshape(B, L, P, -1), stacked


# ----------------------------------------------------------------------------- params
def _normal(key, shape, dtype=jnp.bfloat16, scale=0.02):
    return (scale * jax.random.normal(key, shape, dtype=jnp.float32)).astype(dtype)


def init_block_params(key, cfg):
    D, I = cfg["d_model"], cfg["intermediate_size"]
    d_inner, conv_dim, d_in_proj, K = (cfg["d_inner"], cfg["conv_dim"],
                                       cfg["d_in_proj"], cfg["d_conv"])
    ks = jax.random.split(key, 8)
    return {
        "input_ln": jnp.ones((D,), jnp.bfloat16),
        "post_ln": jnp.ones((D,), jnp.bfloat16),
        "mixer": {
            "in_proj_t": _normal(ks[0], (D, d_in_proj)),     # Linear(D, d_in_proj).W^T
            "conv_w": _normal(ks[1], (K, conv_dim), dtype=jnp.float32),
            "conv_b": _normal(ks[2], (1, conv_dim), dtype=jnp.float32),
            "z_bias": jnp.zeros((1, d_inner), jnp.float32),
            "D": jnp.ones((1, cfg["n_v_heads"]), jnp.float32),
            "out_proj_t": _normal(ks[3], (d_inner, D)),
        },
        "mlp": {
            "gate_t": _normal(ks[4], (D, I)),
            "up_t": _normal(ks[5], (D, I)),
            "down_t": _normal(ks[6], (I, D)),
        },
    }


def init_params(key, cfg):
    D, V = cfg["d_model"], cfg["vocab_size"]
    n_layer, n_mtp = cfg["n_layer"], cfg["prediction_heads"] - 1
    ks = jax.random.split(key, 2 + n_layer + n_mtp)
    return {
        "embedding": _normal(ks[0], (V, D)),
        "layers": [init_block_params(ks[2 + i], cfg) for i in range(n_layer)],
        "mtp_heads": [init_block_params(ks[2 + n_layer + i], cfg) for i in range(n_mtp)],
        "mtp_norms": [jnp.ones((D,), jnp.bfloat16) for _ in range(n_mtp)],
        "final_ln": jnp.ones((D,), jnp.bfloat16),
        "lm_head_t": _normal(ks[1], (D, V)),  # tie_embeddings=False, no bias
    }


# ----------------------------------------------------------------------------- main
if __name__ == "__main__":
    cfg = dict(
        d_model=128,
        n_layer=2,
        prediction_heads=2,
        vocab_size=256,        # multiple of pad_vocab_size_multiple=16, lane-dense
        norm_epsilon=1e-5,
        d_state=32,
        n_qk_heads=2,
        n_v_heads=2,
        d_conv=4,
        expand=1,
        intermediate_size=256,
    )
    cfg["d_inner"] = cfg["expand"] * cfg["d_model"]
    cfg["headdim"] = cfg["d_inner"] // cfg["n_v_heads"]
    cfg["conv_dim"] = cfg["d_inner"] + 2 * cfg["n_qk_heads"] * cfg["d_state"]
    cfg["d_in_proj"] = (2 * cfg["d_inner"] + 2 * cfg["n_qk_heads"] * cfg["d_state"]
                        + cfg["n_v_heads"])

    root = jax.random.PRNGKey(0)
    k_params, k_ids = jax.random.split(root)
    params = init_params(k_params, cfg)

    B, L = 2, 8
    input_ids = jax.random.randint(k_ids, (B, L), 0, cfg["vocab_size"], dtype=jnp.int32)

    fwd = jax.jit(lambda ids, ps: mtp_llamba_forward(ids, ps, cfg))
    logits, stacked_latents = fwd(input_ids, params)
    jax.block_until_ready((logits, stacked_latents))

    assert logits.shape == (B, L, cfg["prediction_heads"], cfg["vocab_size"])
    assert logits.dtype == jnp.float32
    assert stacked_latents.shape == (B, L, cfg["prediction_heads"], cfg["d_model"])
    assert bool(jnp.isfinite(logits).all())
    print("KERNEL_OK")
</pallas_src>

<mosaic_0001>
module attributes {stable_mosaic.version = 11 : i64} {
  func.func @_rms_matmul_kernel(%arg0: i32, %arg1: i32, %arg2: memref<16x128xbf16, #tpu.memory_space<vmem>>, %arg3: memref<1x128xbf16, #tpu.memory_space<vmem>>, %arg4: memref<128x256xbf16, #tpu.memory_space<vmem>>, %arg5: memref<16x256xbf16, #tpu.memory_space<vmem>>) attributes {dimension_semantics = [#tpu.dimension_semantics<parallel>, #tpu.dimension_semantics<parallel>], iteration_bounds = array<i64: 1, 2>, scalar_prefetch = 0 : i64, scratch_operands = 0 : i64, tpu.core_type = #tpu.core_type<tc>, window_params = [{transform_indices = @transform_0, window_bounds = array<i64: 16, 128>}, {pipeline_mode = #tpu.pipeline_mode<synchronous>, transform_indices = @transform_1, window_bounds = array<i64: 1, 128>}, {transform_indices = @transform_2, window_bounds = array<i64: 128, 256>}, {transform_indices = @transform_3, window_bounds = array<i64: 16, 256>}]} {
    %c0 = arith.constant 0 : index
    %c0_0 = arith.constant 0 : index
    %0 = vector.load %arg2[%c0, %c0_0] : memref<16x128xbf16, #tpu.memory_space<vmem>>, vector<16x128xbf16>
    %1 = arith.extf %0 : vector<16x128xbf16> to vector<16x128xf32>
    %2 = arith.mulf %1, %1 : vector<16x128xf32>
    %cst = arith.constant dense<0.000000e+00> : vector<16xf32>
    %3 = vector.multi_reduction <add>, %2, %cst [1] : vector<16x128xf32> to vector<16xf32>
    %4 = vector.shape_cast %3 : vector<16xf32> to vector<16x1xf32>
    %cst_1 = arith.constant 1.280000e+02 : f32
    %5 = vector.broadcast %cst_1 : f32 to vector<16x1xf32>
    %6 = arith.divf %4, %5 : vector<16x1xf32>
    %cst_2 = arith.constant 9.99999974E-6 : f32
    %7 = vector.broadcast %cst_2 : f32 to vector<16x1xf32>
    %8 = arith.addf %6, %7 : vector<16x1xf32>
    %9 = math.rsqrt %8 : vector<16x1xf32>
    %10 = vector.broadcast %9 : vector<16x1xf32> to vector<16x128xf32>
    %11 = arith.mulf %1, %10 : vector<16x128xf32>
    %12 = arith.truncf %11 : vector<16x128xf32> to vector<16x128xbf16>
    %c0_3 = arith.constant 0 : index
    %c0_4 = arith.constant 0 : index
    %13 = vector.load %arg3[%c0_3, %c0_4] : memref<1x128xbf16, #tpu.memory_space<vmem>>, vector<1x128xbf16>
    %14 = vector.broadcast %13 : vector<1x128xbf16> to vector<16x128xbf16>
    %15 = arith.mulf %12, %14 : vector<16x128xbf16>
    %c0_5 = arith.constant 0 : index
    %c0_6 = arith.constant 0 : index
    %16 = vector.load %arg4[%c0_5, %c0_6] : memref<128x256xbf16, #tpu.memory_space<vmem>>, vector<128x256xbf16>
    %cst_7 = arith.constant dense<0.000000e+00> : vector<16x256xf32>
    %17 = tpu.matmul %15, %16, %cst_7 {dimension_numbers = #tpu.dot_dimension_numbers<[1], [0], [0], [1], [0, 0, 1, 1], [], []>} : vector<16x128xbf16>, vector<128x256xbf16>, vector<16x256xf32> -> vector<16x256xf32>
    %18 = arith.truncf %17 : vector<16x256xf32> to vector<16x256xbf16>
    %c0_8 = arith.constant 0 : index
    %c0_9 = arith.constant 0 : index
    %19 = vector.load %arg5[%c0_8, %c0_9] : memref<16x256xbf16, #tpu.memory_space<vmem>>, vector<16x256xbf16>
    tpu.vector_store %arg5[%c0_8, %c0_9], %18 {strides = array<i32>} : memref<16x256xbf16, #tpu.memory_space<vmem>>, vector<16x256xbf16>,
    return
  }
  func.func @transform_0(%arg0: i32, %arg1: i32) -> (i32, i32) {
    %c0_i32 = arith.constant 0 : i32
    %c0_i32_0 = arith.constant 0 : i32
    return %arg0, %c0_i32 : i32, i32
  }
  func.func @transform_1(%arg0: i32, %arg1: i32) -> (i32, i32) {
    %c0_i32 = arith.constant 0 : i32
    %c0_i32_0 = arith.constant 0 : i32
    %c0_i32_1 = arith.constant 0 : i32
    return %c0_i32, %c0_i32_0 : i32, i32
  }
  func.func @transform_2(%arg0: i32, %arg1: i32) -> (i32, i32) {
    %c0_i32 = arith.constant 0 : i32
    %c0_i32_0 = arith.constant 0 : i32
    return %c0_i32, %arg1 : i32, i32
  }
  func.func @transform_3(%arg0: i32, %arg1: i32) -> (i32, i32) {
    %c0_i32 = arith.constant 0 : i32
    return %arg0, %arg1 : i32, i32
  }
}

module attributes {stable_mosaic.version = 11 : i64} {
  func.func @_mamba_core_kernel(%arg0: i32, %arg1: memref<1x8x386xbf16, #tpu.memory_space<vmem>>, %arg2: memref<4x256xf32, #tpu.memory_space<vmem>>, %arg3: memref<1x256xf32, #tpu.memory_space<vmem>>, %arg4: memref<1x128xf32, #tpu.memory_space<vmem>>, %arg5: memref<1x2xf32, #tpu.memory_space<smem>>, %arg6: memref<1x8x128xbf16, #tpu.memory_space<vmem>>) attributes {dimension_semantics = [#tpu.dimension_semantics<parallel>], iteration_bounds = array<i64: 2>, scalar_prefetch = 0 : i64, scratch_operands = 0 : i64, tpu.core_type = #tpu.core_type<tc>, window_params = [{transform_indices = @transform_0, window_bounds = array<i64: 1, 8, 386>}, {pipeline_mode = #tpu.pipeline_mode<synchronous>, transform_indices = @transform_1, window_bounds = array<i64: 4, 256>}, {pipeline_mode = #tpu.pipeline_mode<synchronous>, transform_indices = @transform_2, window_bounds = array<i64: 1, 256>}, {pipeline_mode = #tpu.pipeline_mode<synchronous>, transform_indices = @transform_3, window_bounds = array<i64: 1, 128>}, {transform_indices = @transform_4, window_bounds = array<i64: 1, 2>}, {transform_indices = @transform_5, window_bounds = array<i64: 1, 8, 128>}]} {
    %c0 = arith.constant 0 : index
    %c0_0 = arith.constant 0 : index
    %c128 = arith.constant 128 : index
    %0 = vector.load %arg1[%c0, %c0_0, %c128] : memref<1x8x386xbf16, #tpu.memory_space<vmem>>, vector<1x8x256xbf16>
    %1 = vector.shape_cast %0 : vector<1x8x256xbf16> to vector<8x256xbf16>
    %2 = arith.extf %1 : vector<8x256xbf16> to vector<8x256xf32>
    %c0_1 = arith.constant 0 : index
    %c0_2 = arith.constant 0 : index
    %c384 = arith.constant 384 : index
    %3 = vector.load %arg1[%c0_1, %c0_2, %c384] : memref<1x8x386xbf16, #tpu.memory_space<vmem>>, vector<1x8x2xbf16>
    %4 = vector.shape_cast %3 : vector<1x8x2xbf16> to vector<8x2xbf16>
    %5 = arith.extf %4 : vector<8x2xbf16> to vector<8x2xf32>
    %c0_3 = arith.constant 0 : index
    %c0_4 = arith.constant 0 : index
    %6 = vector.load %arg2[%c0_3, %c0_4] : memref<4x256xf32, #tpu.memory_space<vmem>>, vector<4x256xf32>
    %7 = tpu.iota {dimensions = array<i32: 0>} : vector<8x256xi32>
    %c0_5 = arith.constant 0 : index
    %c0_6 = arith.constant 0 : index
    %8 = vector.load %arg3[%c0_5, %c0_6] : memref<1x256xf32, #tpu.memory_space<vmem>>, vector<1x256xf32>
    %9 = vector.shape_cast %8 : vector<1x256xf32> to vector<1x256xf32>
    %10 = vector.broadcast %9 : vector<1x256xf32> to vector<8x256xf32>
    %11 = vector.extract_strided_slice %6 {offsets = [3, 0], sizes = [1, 256], strides = [1, 1]} : vector<4x256xf32> to vector<1x256xf32>
    %12 = vector.shape_cast %11 : vector<1x256xf32> to vector<256xf32>
    %13 = vector.shape_cast %12 : vector<256xf32> to vector<1x256xf32>
    %14 = vector.broadcast %13 : vector<1x256xf32> to vector<8x256xf32>
    %15 = arith.mulf %14, %2 : vector<8x256xf32>
    %16 = arith.addf %10, %15 : vector<8x256xf32>
    %c1_i32 = arith.constant 1 : i32
    %17 = tpu.dynamic_rotate %2 by %c1_i32 dim 0 : vector<8x256xf32>, i32 -> vector<8x256xf32>
    %c1_i32_7 = arith.constant 1 : i32
    %18 = vector.broadcast %c1_i32_7 : i32 to vector<8x256xi32>
    %19 = arith.cmpi sge, %7, %18 : vector<8x256xi32>
    %cst = arith.constant 0.000000e+00 : f32
    %20 = vector.broadcast %cst : f32 to vector<8x256xf32>
    %21 = arith.select %19, %17, %20 : vector<8x256xi1>, vector<8x256xf32>
    %22 = vector.extract_strided_slice %6 {offsets = [2, 0], sizes = [1, 256], strides = [1, 1]} : vector<4x256xf32> to vector<1x256xf32>
    %23 = vector.shape_cast %22 : vector<1x256xf32> to vector<256xf32>
    %24 = vector.shape_cast %23 : vector<256xf32> to vector<1x256xf32>
    %25 = vector.broadcast %24 : vector<1x256xf32> to vector<8x256xf32>
    %26 = arith.mulf %25, %21 : vector<8x256xf32>
    %27 = arith.addf %16, %26 : vector<8x256xf32>
    %c2_i32 = arith.constant 2 : i32
    %28 = tpu.dynamic_rotate %2 by %c2_i32 dim 0 : vector<8x256xf32>, i32 -> vector<8x256xf32>
    %c2_i32_8 = arith.constant 2 : i32
    %29 = vector.broadcast %c2_i32_8 : i32 to vector<8x256xi32>
    %30 = arith.cmpi sge, %7, %29 : vector<8x256xi32>
    %cst_9 = arith.constant 0.000000e+00 : f32
    %31 = vector.broadcast %cst_9 : f32 to vector<8x256xf32>
    %32 = arith.select %30, %28, %31 : vector<8x256xi1>, vector<8x256xf32>
    %33 = vector.extract_strided_slice %6 {offsets = [1, 0], sizes = [1, 256], strides = [1, 1]} : vector<4x256xf32> to vector<1x256xf32>
    %34 = vector.shape_cast %33 : vector<1x256xf32> to vector<256xf32>
    %35 = vector.shape_cast %34 : vector<256xf32> to vector<1x256xf32>
    %36 = vector.broadcast %35 : vector<1x256xf32> to vector<8x256xf32>
    %37 = arith.mulf %36, %32 : vector<8x256xf32>
    %38 = arith.addf %27, %37 : vector<8x256xf32>
    %c3_i32 = arith.constant 3 : i32
    %39 = tpu.dynamic_rotate %2 by %c3_i32 dim 0 : vector<8x256xf32>, i32 -> vector<8x256xf32>
    %c3_i32_10 = arith.constant 3 : i32
    %40 = vector.broadcast %c3_i32_10 : i32 to vector<8x256xi32>
    %41 = arith.cmpi sge, %7, %40 : vector<8x256xi32>
    %cst_11 = arith.constant 0.000000e+00 : f32
    %42 = vector.broadcast %cst_11 : f32 to vector<8x256xf32>
    %43 = arith.select %41, %39, %42 : vector<8x256xi1>, vector<8x256xf32>
    %44 = vector.extract_strided_slice %6 {offsets = [0, 0], sizes = [1, 256], strides = [1, 1]} : vector<4x256xf32> to vector<1x256xf32>
    %45 = vector.shape_cast %44 : vector<1x256xf32> to vector<256xf32>
    %46 = vector.shape_cast %45 : vector<256xf32> to vector<1x256xf32>
    %47 = vector.broadcast %46 : vector<1x256xf32> to vector<8x256xf32>
    %48 = arith.mulf %47, %43 : vector<8x256xf32>
    %49 = arith.addf %38, %48 : vector<8x256xf32>
    %50 = vector.extract_strided_slice %49 {offsets = [0, 0], sizes = [8, 64], strides = [1, 1]} : vector<8x256xf32> to vector<8x64xf32>
    %51 = vector.extract_strided_slice %49 {offsets = [0, 128], sizes = [8, 32], strides = [1, 1]} : vector<8x256xf32> to vector<8x32xf32>
    %52 = vector.extract_strided_slice %49 {offsets = [0, 192], sizes = [8, 32], strides = [1, 1]} : vector<8x256xf32> to vector<8x32xf32>
    %53 = vector.extract_strided_slice %49 {offsets = [0, 64], sizes = [8, 64], strides = [1, 1]} : vector<8x256xf32> to vector<8x64xf32>
    %54 = vector.extract_strided_slice %49 {offsets = [0, 160], sizes = [8, 32], strides = [1, 1]} : vector<8x256xf32> to vector<8x32xf32>
    %55 = vector.extract_strided_slice %49 {offsets = [0, 224], sizes = [8, 32], strides = [1, 1]} : vector<8x256xf32> to vector<8x32xf32>
    %56 = vector.shape_cast %50 : vector<8x64xf32> to vector<1x8x64xf32>
    %57 = vector.shape_cast %53 : vector<8x64xf32> to vector<1x8x64xf32>
    %58 = tpu.concatenate %56, %57 in 0 : vector<1x8x64xf32>, vector<1x8x64xf32> -> vector<2x8x64xf32>
    %59 = vector.shape_cast %51 : vector<8x32xf32> to vector<1x8x32xf32>
    %60 = vector.shape_cast %54 : vector<8x32xf32> to vector<1x8x32xf32>
    %61 = tpu.concatenate %59, %60 in 0 : vector<1x8x32xf32>, vector<1x8x32xf32> -> vector<2x8x32xf32>
    %62 = vector.shape_cast %52 : vector<8x32xf32> to vector<1x8x32xf32>
    %63 = vector.shape_cast %55 : vector<8x32xf32> to vector<1x8x32xf32>
    %64 = tpu.concatenate %62, %63 in 0 : vector<1x8x32xf32>, vector<1x8x32xf32> -> vector<2x8x32xf32>
    %65 = tpu.iota {dimensions = array<i32: 0>} : vector<8x8xi32>
    %66 = tpu.iota {dimensions = array<i32: 1>} : vector<8x8xi32>
    %67 = arith.cmpi sge, %65, %66 : vector<8x8xi32>
    %68 = arith.extui %67 : vector<8x8xi1> to vector<8x8xi32>
    %69 = arith.sitofp %68 : vector<8x8xi32> to vector<8x8xf32>
    %cst_12 = arith.constant 0.000000e+00 : f32
    %70 = vector.broadcast %cst_12 : f32 to vector<8x2xf32>
    %71 = arith.maximumf %5, %70 : vector<8x2xf32>
    %72 = vector.broadcast %cst_12 : f32 to vector<8x2xf32>
    %73 = arith.subf %5, %72 : vector<8x2xf32>
    %74 = arith.cmpf one, %73, %73 : vector<8x2xf32>
    %75 = vector.broadcast %cst_12 : f32 to vector<8x2xf32>
    %76 = arith.addf %5, %75 : vector<8x2xf32>
    %77 = math.absf %73 : vector<8x2xf32>
    %cst_13 = arith.constant 0.000000e+00 : f32
    %78 = vector.broadcast %cst_13 : f32 to vector<8x2xf32>
    %79 = arith.subf %78, %77 : vector<8x2xf32>
    %80 = math.exp %79 : vector<8x2xf32>
    %81 = math.log1p %80 : vector<8x2xf32>
    %82 = arith.addf %71, %81 : vector<8x2xf32>
    %83 = arith.select %74, %76, %82 : vector<8x2xi1>, vector<8x2xf32>
    %cst_14 = arith.constant dense<0.000000e+00> : vector<8x2xf32>
    %84 = tpu.matmul %69, %83, %cst_14 {dimension_numbers = #tpu.dot_dimension_numbers<[1], [0], [0], [1], [0, 0, 1, 1], [], []>} : vector<8x8xf32>, vector<8x2xf32>, vector<8x2xf32> -> vector<8x2xf32>
    %85 = tpu.transpose %84, [1, 0] : vector<8x2xf32> -> vector<2x8xf32>
    %86 = vector.shape_cast %85 : vector<2x8xf32> to vector<2x8x1xf32>
    %87 = vector.shape_cast %85 : vector<2x8xf32> to vector<2x1x8xf32>
    %88 = vector.broadcast %86 : vector<2x8x1xf32> to vector<2x8x8xf32>
    %89 = vector.broadcast %87 : vector<2x1x8xf32> to vector<2x8x8xf32>
    %90 = arith.subf %88, %89 : vector<2x8x8xf32>
    %91 = vector.shape_cast %67 : vector<8x8xi1> to vector<1x8x8xi1>
    %cst_15 = arith.constant 0.000000e+00 : f32
    %92 = vector.broadcast %cst_15 : f32 to vector<2x8x8xf32>
    %93 = arith.subf %92, %90 : vector<2x8x8xf32>
    %cst_16 = arith.constant 0xFF800000 : f32
    %94 = vector.shape_cast %91 : vector<1x8x8xi1> to vector<1x8x8xi1>
    %95 = vector.broadcast %94 : vector<1x8x8xi1> to vector<2x8x8xi1>
    %96 = vector.broadcast %cst_16 : f32 to vector<2x8x8xf32>
    %97 = arith.select %95, %93, %96 : vector<2x8x8xi1>, vector<2x8x8xf32>
    %98 = math.exp %97 : vector<2x8x8xf32>
    "tpu.trace_start"() <{level = 10 : i32, message = "hln,hsn->hls"}> : () -> ()
    %cst_17 = arith.constant dense<0.000000e+00> : vector<2x8x8xf32>
    %99 = tpu.matmul %64, %61, %cst_17 {dimension_numbers = #tpu.dot_dimension_numbers<[2], [2], [1], [1], [0, 0, 0, 1, 1, 1], [0], [0]>} : vector<2x8x32xf32>, vector<2x8x32xf32>, vector<2x8x8xf32> -> vector<2x8x8xf32>
    "tpu.trace_stop"() : () -> ()
    %100 = arith.mulf %98, %99 : vector<2x8x8xf32>
    "tpu.trace_start"() <{level = 10 : i32, message = "hls,hsp->hlp"}> : () -> ()
    %cst_18 = arith.constant dense<0.000000e+00> : vector<2x8x64xf32>
    %101 = tpu.matmul %100, %58, %cst_18 {dimension_numbers = #tpu.dot_dimension_numbers<[2], [1], [1], [2], [0, 0, 0, 1, 1, 2], [0], [0]>} : vector<2x8x8xf32>, vector<2x8x64xf32>, vector<2x8x64xf32> -> vector<2x8x64xf32>
    "tpu.trace_stop"() : () -> ()
    %c0_19 = arith.constant 0 : index
    %c0_20 = arith.constant 0 : index
    %102 = vector.load %arg4[%c0_19, %c0_20] : memref<1x128xf32, #tpu.memory_space<vmem>>, vector<1x128xf32>
    %103 = vector.extract_strided_slice %101 {offsets = [0, 0, 0], sizes = [1, 8, 64], strides = [1, 1, 1]} : vector<2x8x64xf32> to vector<1x8x64xf32>
    %104 = vector.shape_cast %103 : vector<1x8x64xf32> to vector<8x64xf32>
    %c0_21 = arith.constant 0 : index
    %c0_22 = arith.constant 0 : index
    %105 = memref.load %arg5[%c0_21, %c0_22] : memref<1x2xf32, #tpu.memory_space<smem>>
    %106 = vector.extract_strided_slice %58 {offsets = [0, 0, 0], sizes = [1, 8, 64], strides = [1, 1, 1]} : vector<2x8x64xf32> to vector<1x8x64xf32>
    %107 = vector.shape_cast %106 : vector<1x8x64xf32> to vector<8x64xf32>
    %108 = vector.broadcast %105 : f32 to vector<8x64xf32>
    %109 = arith.mulf %108, %107 : vector<8x64xf32>
    %110 = arith.addf %104, %109 : vector<8x64xf32>
    %c0_23 = arith.constant 0 : index
    %c0_24 = arith.constant 0 : index
    %c0_25 = arith.constant 0 : index
    %111 = vector.load %arg1[%c0_23, %c0_24, %c0_25] : memref<1x8x386xbf16, #tpu.memory_space<vmem>>, vector<1x8x64xbf16>
    %112 = vector.shape_cast %111 : vector<1x8x64xbf16> to vector<8x64xbf16>
    %113 = arith.extf %112 : vector<8x64xbf16> to vector<8x64xf32>
    %114 = vector.extract_strided_slice %102 {offsets = [0, 0], sizes = [1, 64], strides = [1, 1]} : vector<1x128xf32> to vector<1x64xf32>
    %115 = vector.broadcast %114 : vector<1x64xf32> to vector<8x64xf32>
    %116 = arith.addf %113, %115 : vector<8x64xf32>
    %117 = arith.negf %116 : vector<8x64xf32>
    %118 = math.exp %117 : vector<8x64xf32>
    %cst_26 = arith.constant 1.000000e+00 : f32
    %119 = vector.broadcast %cst_26 : f32 to vector<8x64xf32>
    %120 = arith.addf %119, %118 : vector<8x64xf32>
    %121 = arith.divf %119, %120 : vector<8x64xf32>
    %122 = arith.mulf %116, %121 : vector<8x64xf32>
    %123 = arith.mulf %110, %122 : vector<8x64xf32>
    %124 = arith.truncf %123 : vector<8x64xf32> to vector<8x64xbf16>
    %c0_27 = arith.constant 0 : index
    %c0_28 = arith.constant 0 : index
    %c0_29 = arith.constant 0 : index
    %125 = vector.load %arg6[%c0_27, %c0_28, %c0_29] : memref<1x8x128xbf16, #tpu.memory_space<vmem>>, vector<1x8x64xbf16>
    %126 = vector.shape_cast %125 : vector<1x8x64xbf16> to vector<8x64xbf16>
    %127 = vector.shape_cast %124 : vector<8x64xbf16> to vector<1x8x64xbf16>
    tpu.vector_store %arg6[%c0_27, %c0_28, %c0_29], %127 {strides = array<i32>} : memref<1x8x128xbf16, #tpu.memory_space<vmem>>, vector<1x8x64xbf16>,
    %128 = vector.extract_strided_slice %101 {offsets = [1, 0, 0], sizes = [1, 8, 64], strides = [1, 1, 1]} : vector<2x8x64xf32> to vector<1x8x64xf32>
    %129 = vector.shape_cast %128 : vector<1x8x64xf32> to vector<8x64xf32>
    %c0_30 = arith.constant 0 : index
    %c1 = arith.constant 1 : index
    %130 = memref.load %arg5[%c0_30, %c1] : memref<1x2xf32, #tpu.memory_space<smem>>
    %131 = vector.extract_strided_slice %58 {offsets = [1, 0, 0], sizes = [1, 8, 64], strides = [1, 1, 1]} : vector<2x8x64xf32> to vector<1x8x64xf32>
    %132 = vector.shape_cast %131 : vector<1x8x64xf32> to vector<8x64xf32>
    %133 = vector.broadcast %130 : f32 to vector<8x64xf32>
    %134 = arith.mulf %133, %132 : vector<8x64xf32>
    %135 = arith.addf %129, %134 : vector<8x64xf32>
    %c0_31 = arith.constant 0 : index
    %c0_32 = arith.constant 0 : index
    %c64 = arith.constant 64 : index
    %136 = vector.load %arg1[%c0_31, %c0_32, %c64] : memref<1x8x386xbf16, #tpu.memory_space<vmem>>, vector<1x8x64xbf16>
    %137 = vector.shape_cast %136 : vector<1x8x64xbf16> to vector<8x64xbf16>
    %138 = arith.extf %137 : vector<8x64xbf16> to vector<8x64xf32>
    %139 = vector.extract_strided_slice %102 {offsets = [0, 64], sizes = [1, 64], strides = [1, 1]} : vector<1x128xf32> to vector<1x64xf32>
    %140 = vector.broadcast %139 : vector<1x64xf32> to vector<8x64xf32>
    %141 = arith.addf %138, %140 : vector<8x64xf32>
    %142 = arith.negf %141 : vector<8x64xf32>
    %143 = math.exp %142 : vector<8x64xf32>
    %cst_33 = arith.constant 1.000000e+00 : f32
    %144 = vector.broadcast %cst_33 : f32 to vector<8x64xf32>
    %145 = arith.addf %144, %143 : vector<8x64xf32>
    %146 = arith.divf %144, %145 : vector<8x64xf32>
    %147 = arith.mulf %141, %146 : vector<8x64xf32>
    %148 = arith.mulf %135, %147 : vector<8x64xf32>
    %149 = arith.truncf %148 : vector<8x64xf32> to vector<8x64xbf16>
    %c0_34 = arith.constant 0 : index
    %c0_35 = arith.constant 0 : index
    %c64_36 = arith.constant 64 : index
    %150 = vector.load %arg6[%c0_34, %c0_35, %c64_36] : memref<1x8x128xbf16, #tpu.memory_space<vmem>>, vector<1x8x64xbf16>
    %151 = vector.shape_cast %150 : vector<1x8x64xbf16> to vector<8x64xbf16>
    %152 = vector.shape_cast %149 : vector<8x64xbf16> to vector<1x8x64xbf16>
    tpu.vector_store %arg6[%c0_34, %c0_35, %c64_36], %152 {strides = array<i32>} : memref<1x8x128xbf16, #tpu.memory_space<vmem>>, vector<1x8x64xbf16>,
    return
  }
  func.func @transform_0(%arg0: i32) -> (i32, i32, i32) {
    %c0_i32 = arith.constant 0 : i32
    %c0_i32_0 = arith.constant 0 : i32
    %c0_i32_1 = arith.constant 0 : i32
    return %arg0, %c0_i32, %c0_i32_0 : i32, i32, i32
  }
  func.func @transform_1(%arg0: i32) -> (i32, i32) {
    %c0_i32 = arith.constant 0 : i32
    %c0_i32_0 = arith.constant 0 : i32
    %c0_i32_1 = arith.constant 0 : i32
    return %c0_i32, %c0_i32_0 : i32, i32
  }
  func.func @transform_2(%arg0: i32) -> (i32, i32) {
    %c0_i32 = arith.constant 0 : i32
    %c0_i32_0 = arith.constant 0 : i32
    %c0_i32_1 = arith.constant 0 : i32
    return %c0_i32, %c0_i32_0 : i32, i32
  }
  func.func @transform_3(%arg0: i32) -> (i32, i32) {
    %c0_i32 = arith.constant 0 : i32
    %c0_i32_0 = arith.constant 0 : i32
    %c0_i32_1 = arith.constant 0 : i32
    return %c0_i32, %c0_i32_0 : i32, i32
  }
  func.func @transform_4(%arg0: i32) -> (i32, i32) {
    %c0_i32 = arith.constant 0 : i32
    %c0_i32_0 = arith.constant 0 : i32
    %c0_i32_1 = arith.constant 0 : i32
    return %c0_i32, %c0_i32_0 : i32, i32
  }
  func.func @transform_5(%arg0: i32) -> (i32, i32, i32) {
    %c0_i32 = arith.constant 0 : i32
    %c0_i32_0 = arith.constant 0 : i32
    %c0_i32_1 = arith.constant 0 : i32
    return %arg0, %c0_i32, %c0_i32_0 : i32, i32, i32
  }
}

module attributes {stable_mosaic.version = 11 : i64} {
  func.func @_matmul_residual_kernel(%arg0: i32, %arg1: i32, %arg2: i32, %arg3: memref<16x128xbf16, #tpu.memory_space<vmem>>, %arg4: memref<128x128xbf16, #tpu.memory_space<vmem>>, %arg5: memref<16x128xbf16, #tpu.memory_space<vmem>>, %arg6: memref<16x128xbf16, #tpu.memory_space<vmem>>, %arg7: memref<16x128xf32, #tpu.memory_space<vmem>>) attributes {dimension_semantics = [#tpu.dimension_semantics<parallel>, #tpu.dimension_semantics<parallel>, #tpu.dimension_semantics<arbitrary>], iteration_bounds = array<i64: 1, 1, 1>, scalar_prefetch = 0 : i64, scratch_operands = 1 : i64, tpu.core_type = #tpu.core_type<tc>, window_params = [{transform_indices = @transform_0, window_bounds = array<i64: 16, 128>}, {transform_indices = @transform_1, window_bounds = array<i64: 128, 128>}, {transform_indices = @transform_2, window_bounds = array<i64: 16, 128>}, {transform_indices = @transform_3, window_bounds = array<i64: 16, 128>}]} {
    %c0_i32 = arith.constant 0 : i32
    %0 = arith.cmpi eq, %arg2, %c0_i32 : i32
    %1 = arith.extui %0 : i1 to i32
    %c0_i32_0 = arith.constant 0 : i32
    %2 = arith.cmpi ne, %1, %c0_i32_0 : i32
    scf.if %2 {
      %cst_10 = arith.constant 0.000000e+00 : f32
      %12 = vector.broadcast %cst_10 : f32 to vector<16x128xf32>
      %c0_11 = arith.constant 0 : index
      %c0_12 = arith.constant 0 : index
      %13 = vector.load %arg7[%c0_11, %c0_12] : memref<16x128xf32, #tpu.memory_space<vmem>>, vector<16x128xf32>
      tpu.vector_store %arg7[%c0_11, %c0_12], %12 {strides = array<i32>} : memref<16x128xf32, #tpu.memory_space<vmem>>, vector<16x128xf32>,
    } else {
    }
    %c0 = arith.constant 0 : index
    %c0_1 = arith.constant 0 : index
    %3 = vector.load %arg7[%c0, %c0_1] : memref<16x128xf32, #tpu.memory_space<vmem>>, vector<16x128xf32>
    %c0_2 = arith.constant 0 : index
    %c0_3 = arith.constant 0 : index
    %4 = vector.load %arg3[%c0_2, %c0_3] : memref<16x128xbf16, #tpu.memory_space<vmem>>, vector<16x128xbf16>
    %c0_4 = arith.constant 0 : index
    %c0_5 = arith.constant 0 : index
    %5 = vector.load %arg4[%c0_4, %c0_5] : memref<128x128xbf16, #tpu.memory_space<vmem>>, vector<128x128xbf16>
    %cst = arith.constant dense<0.000000e+00> : vector<16x128xf32>
    %6 = tpu.matmul %4, %5, %cst {dimension_numbers = #tpu.dot_dimension_numbers<[1], [0], [0], [1], [0, 0, 1, 1], [], []>} : vector<16x128xbf16>, vector<128x128xbf16>, vector<16x128xf32> -> vector<16x128xf32>
    %7 = arith.addf %3, %6 : vector<16x128xf32>
    %c0_6 = arith.constant 0 : index
    %c0_7 = arith.constant 0 : index
    %8 = vector.load %arg7[%c0_6, %c0_7] : memref<16x128xf32, #tpu.memory_space<vmem>>, vector<16x128xf32>
    tpu.vector_store %arg7[%c0_6, %c0_7], %7 {strides = array<i32>} : memref<16x128xf32, #tpu.memory_space<vmem>>, vector<16x128xf32>,
    %c0_i32_8 = arith.constant 0 : i32
    %9 = arith.cmpi eq, %arg2, %c0_i32_8 : i32
    %10 = arith.extui %9 : i1 to i32
    %c0_i32_9 = arith.constant 0 : i32
    %11 = arith.cmpi ne, %10, %c0_i32_9 : i32
    scf.if %11 {
      %c0_10 = arith.constant 0 : index
      %c0_11 = arith.constant 0 : index
      %12 = vector.load %arg7[%c0_10, %c0_11] : memref<16x128xf32, #tpu.memory_space<vmem>>, vector<16x128xf32>
      %c0_12 = arith.constant 0 : index
      %c0_13 = arith.constant 0 : index
      %13 = vector.load %arg5[%c0_12, %c0_13] : memref<16x128xbf16, #tpu.memory_space<vmem>>, vector<16x128xbf16>
      %14 = arith.extf %13 : vector<16x128xbf16> to vector<16x128xf32>
      %15 = arith.addf %12, %14 : vector<16x128xf32>
      %16 = arith.truncf %15 : vector<16x128xf32> to vector<16x128xbf16>
      %c0_14 = arith.constant 0 : index
      %c0_15 = arith.constant 0 : index
      %17 = vector.load %arg6[%c0_14, %c0_15] : memref<16x128xbf16, #tpu.memory_space<vmem>>, vector<16x128xbf16>
      tpu.vector_store %arg6[%c0_14, %c0_15], %16 {strides = array<i32>} : memref<16x128xbf16, #tpu.memory_space<vmem>>, vector<16x128xbf16>,
    } else {
    }
    return
  }
  func.func @transform_0(%arg0: i32, %arg1: i32, %arg2: i32) -> (i32, i32) {
    %c0_i32 = arith.constant 0 : i32
    return %arg0, %arg2 : i32, i32
  }
  func.func @transform_1(%arg0: i32, %arg1: i32, %arg2: i32) -> (i32, i32) {
    %c0_i32 = arith.constant 0 : i32
    return %arg2, %arg1 : i32, i32
  }
  func.func @transform_2(%arg0: i32, %arg1: i32, %arg2: i32) -> (i32, i32) {
    %c0_i32 = arith.constant 0 : i32
    return %arg0, %arg1 : i32, i32
  }
  func.func @transform_3(%arg0: i32, %arg1: i32, %arg2: i32) -> (i32, i32) {
    %c0_i32 = arith.constant 0 : i32
    return %arg0, %arg1 : i32, i32
  }
}

module attributes {stable_mosaic.version = 11 : i64} {
  func.func @_rms_mlp_kernel(%arg0: i32, %arg1: i32, %arg2: memref<16x128xbf16, #tpu.memory_space<vmem>>, %arg3: memref<1x128xbf16, #tpu.memory_space<vmem>>, %arg4: memref<128x256xbf16, #tpu.memory_space<vmem>>, %arg5: memref<128x256xbf16, #tpu.memory_space<vmem>>, %arg6: memref<256x128xbf16, #tpu.memory_space<vmem>>, %arg7: memref<16x128xbf16, #tpu.memory_space<vmem>>, %arg8: memref<16x128xbf16, #tpu.memory_space<vmem>>, %arg9: memref<16x128xf32, #tpu.memory_space<vmem>>, %arg10: memref<16x128xbf16, #tpu.memory_space<vmem>>) attributes {dimension_semantics = [#tpu.dimension_semantics<parallel>, #tpu.dimension_semantics<arbitrary>], iteration_bounds = array<i64: 1, 1>, scalar_prefetch = 0 : i64, scratch_operands = 2 : i64, tpu.core_type = #tpu.core_type<tc>, window_params = [{transform_indices = @transform_0, window_bounds = array<i64: 16, 128>}, {pipeline_mode = #tpu.pipeline_mode<synchronous>, transform_indices = @transform_1, window_bounds = array<i64: 1, 128>}, {transform_indices = @transform_2, window_bounds = array<i64: 128, 256>}, {transform_indices = @transform_3, window_bounds = array<i64: 128, 256>}, {transform_indices = @transform_4, window_bounds = array<i64: 256, 128>}, {transform_indices = @transform_5, window_bounds = array<i64: 16, 128>}, {transform_indices = @transform_6, window_bounds = array<i64: 16, 128>}]} {
    %c0_i32 = arith.constant 0 : i32
    %0 = arith.cmpi eq, %arg1, %c0_i32 : i32
    %1 = arith.extui %0 : i1 to i32
    %c0_i32_0 = arith.constant 0 : i32
    %2 = arith.cmpi ne, %1, %c0_i32_0 : i32
    scf.if %2 {
      %c0_17 = arith.constant 0 : index
      %c0_18 = arith.constant 0 : index
      %24 = vector.load %arg2[%c0_17, %c0_18] : memref<16x128xbf16, #tpu.memory_space<vmem>>, vector<16x128xbf16>
      %25 = arith.extf %24 : vector<16x128xbf16> to vector<16x128xf32>
      %26 = arith.mulf %25, %25 : vector<16x128xf32>
      %cst_19 = arith.constant dense<0.000000e+00> : vector<16xf32>
      %27 = vector.multi_reduction <add>, %26, %cst_19 [1] : vector<16x128xf32> to vector<16xf32>
      %28 = vector.shape_cast %27 : vector<16xf32> to vector<16x1xf32>
      %cst_20 = arith.constant 1.280000e+02 : f32
      %29 = vector.broadcast %cst_20 : f32 to vector<16x1xf32>
      %30 = arith.divf %28, %29 : vector<16x1xf32>
      %cst_21 = arith.constant 9.99999974E-6 : f32
      %31 = vector.broadcast %cst_21 : f32 to vector<16x1xf32>
      %32 = arith.addf %30, %31 : vector<16x1xf32>
      %33 = math.rsqrt %32 : vector<16x1xf32>
      %34 = vector.broadcast %33 : vector<16x1xf32> to vector<16x128xf32>
      %35 = arith.mulf %25, %34 : vector<16x128xf32>
      %36 = arith.truncf %35 : vector<16x128xf32> to vector<16x128xbf16>
      %c0_22 = arith.constant 0 : index
      %c0_23 = arith.constant 0 : index
      %37 = vector.load %arg3[%c0_22, %c0_23] : memref<1x128xbf16, #tpu.memory_space<vmem>>, vector<1x128xbf16>
      %38 = vector.broadcast %37 : vector<1x128xbf16> to vector<16x128xbf16>
      %39 = arith.mulf %36, %38 : vector<16x128xbf16>
      %c0_24 = arith.constant 0 : index
      %c0_25 = arith.constant 0 : index
      %40 = vector.load %arg10[%c0_24, %c0_25] : memref<16x128xbf16, #tpu.memory_space<vmem>>, vector<16x128xbf16>
      tpu.vector_store %arg10[%c0_24, %c0_25], %39 {strides = array<i32>} : memref<16x128xbf16, #tpu.memory_space<vmem>>, vector<16x128xbf16>,
      %cst_26 = arith.constant 0.000000e+00 : f32
      %41 = vector.broadcast %cst_26 : f32 to vector<16x128xf32>
      %c0_27 = arith.constant 0 : index
      %c0_28 = arith.constant 0 : index
      %42 = vector.load %arg9[%c0_27, %c0_28] : memref<16x128xf32, #tpu.memory_space<vmem>>, vector<16x128xf32>
      tpu.vector_store %arg9[%c0_27, %c0_28], %41 {strides = array<i32>} : memref<16x128xf32, #tpu.memory_space<vmem>>, vector<16x128xf32>,
    } else {
    }
    %c0 = arith.constant 0 : index
    %c0_1 = arith.constant 0 : index
    %3 = vector.load %arg10[%c0, %c0_1] : memref<16x128xbf16, #tpu.memory_space<vmem>>, vector<16x128xbf16>
    %c0_2 = arith.constant 0 : index
    %c0_3 = arith.constant 0 : index
    %4 = vector.load %arg4[%c0_2, %c0_3] : memref<128x256xbf16, #tpu.memory_space<vmem>>, vector<128x256xbf16>
    %cst = arith.constant dense<0.000000e+00> : vector<16x256xf32>
    %5 = tpu.matmul %3, %4, %cst {dimension_numbers = #tpu.dot_dimension_numbers<[1], [0], [0], [1], [0, 0, 1, 1], [], []>} : vector<16x128xbf16>, vector<128x256xbf16>, vector<16x256xf32> -> vector<16x256xf32>
    %c0_4 = arith.constant 0 : index
    %c0_5 = arith.constant 0 : index
    %6 = vector.load %arg5[%c0_4, %c0_5] : memref<128x256xbf16, #tpu.memory_space<vmem>>, vector<128x256xbf16>
    %cst_6 = arith.constant dense<0.000000e+00> : vector<16x256xf32>
    %7 = tpu.matmul %3, %6, %cst_6 {dimension_numbers = #tpu.dot_dimension_numbers<[1], [0], [0], [1], [0, 0, 1, 1], [], []>} : vector<16x128xbf16>, vector<128x256xbf16>, vector<16x256xf32> -> vector<16x256xf32>
    %8 = arith.negf %5 : vector<16x256xf32>
    %9 = math.exp %8 : vector<16x256xf32>
    %cst_7 = arith.constant 1.000000e+00 : f32
    %10 = vector.broadcast %cst_7 : f32 to vector<16x256xf32>
    %11 = arith.addf %10, %9 : vector<16x256xf32>
    %12 = arith.divf %10, %11 : vector<16x256xf32>
    %13 = arith.mulf %5, %12 : vector<16x256xf32>
    %14 = arith.mulf %13, %7 : vector<16x256xf32>
    %15 = arith.truncf %14 : vector<16x256xf32> to vector<16x256xbf16>
    %c0_8 = arith.constant 0 : index
    %c0_9 = arith.constant 0 : index
    %16 = vector.load %arg9[%c0_8, %c0_9] : memref<16x128xf32, #tpu.memory_space<vmem>>, vector<16x128xf32>
    %c0_10 = arith.constant 0 : index
    %c0_11 = arith.constant 0 : index
    %17 = vector.load %arg6[%c0_10, %c0_11] : memref<256x128xbf16, #tpu.memory_space<vmem>>, vector<256x128xbf16>
    %cst_12 = arith.constant dense<0.000000e+00> : vector<16x128xf32>
    %18 = tpu.matmul %15, %17, %cst_12 {dimension_numbers = #tpu.dot_dimension_numbers<[1], [0], [0], [1], [0, 0, 1, 1], [], []>} : vector<16x256xbf16>, vector<256x128xbf16>, vector<16x128xf32> -> vector<16x128xf32>
    %19 = arith.addf %16, %18 : vector<16x128xf32>
    %c0_13 = arith.constant 0 : index
    %c0_14 = arith.constant 0 : index
    %20 = vector.load %arg9[%c0_13, %c0_14] : memref<16x128xf32, #tpu.memory_space<vmem>>, vector<16x128xf32>
    tpu.vector_store %arg9[%c0_13, %c0_14], %19 {strides = array<i32>} : memref<16x128xf32, #tpu.memory_space<vmem>>, vector<16x128xf32>,
    %c0_i32_15 = arith.constant 0 : i32
    %21 = arith.cmpi eq, %arg1, %c0_i32_15 : i32
    %22 = arith.extui %21 : i1 to i32
    %c0_i32_16 = arith.constant 0 : i32
    %23 = arith.cmpi ne, %22, %c0_i32_16 : i32
    scf.if %23 {
      %c0_17 = arith.constant 0 : index
      %c0_18 = arith.constant 0 : index
      %24 = vector.load %arg9[%c0_17, %c0_18] : memref<16x128xf32, #tpu.memory_space<vmem>>, vector<16x128xf32>
      %c0_19 = arith.constant 0 : index
      %c0_20 = arith.constant 0 : index
      %25 = vector.load %arg7[%c0_19, %c0_20] : memref<16x128xbf16, #tpu.memory_space<vmem>>, vector<16x128xbf16>
      %26 = arith.extf %25 : vector<16x128xbf16> to vector<16x128xf32>
      %27 = arith.addf %24, %26 : vector<16x128xf32>
      %28 = arith.truncf %27 : vector<16x128xf32> to vector<16x128xbf16>
      %c0_21 = arith.constant 0 : index
      %c0_22 = arith.constant 0 : index
      %29 = vector.load %arg8[%c0_21, %c0_22] : memref<16x128xbf16, #tpu.memory_space<vmem>>, vector<16x128xbf16>
      tpu.vector_store %arg8[%c0_21, %c0_22], %28 {strides = array<i32>} : memref<16x128xbf16, #tpu.memory_space<vmem>>, vector<16x128xbf16>,
    } else {
    }
    return
  }
  func.func @transform_0(%arg0: i32, %arg1: i32) -> (i32, i32) {
    %c0_i32 = arith.constant 0 : i32
    %c0_i32_0 = arith.constant 0 : i32
    return %arg0, %c0_i32 : i32, i32
  }
  func.func @transform_1(%arg0: i32, %arg1: i32) -> (i32, i32) {
    %c0_i32 = arith.constant 0 : i32
    %c0_i32_0 = arith.constant 0 : i32
    %c0_i32_1 = arith.constant 0 : i32
    return %c0_i32, %c0_i32_0 : i32, i32
  }
  func.func @transform_2(%arg0: i32, %arg1: i32) -> (i32, i32) {
    %c0_i32 = arith.constant 0 : i32
    %c0_i32_0 = arith.constant 0 : i32
    return %c0_i32, %arg1 : i32, i32
  }
  func.func @transform_3(%arg0: i32, %arg1: i32) -> (i32, i32) {
    %c0_i32 = arith.constant 0 : i32
    %c0_i32_0 = arith.constant 0 : i32
    return %c0_i32, %arg1 : i32, i32
  }
  func.func @transform_4(%arg0: i32, %arg1: i32) -> (i32, i32) {
    %c0_i32 = arith.constant 0 : i32
    %c0_i32_0 = arith.constant 0 : i32
    return %arg1, %c0_i32 : i32, i32
  }
  func.func @transform_5(%arg0: i32, %arg1: i32) -> (i32, i32) {
    %c0_i32 = arith.constant 0 : i32
    %c0_i32_0 = arith.constant 0 : i32
    return %arg0, %c0_i32 : i32, i32
  }
  func.func @transform_6(%arg0: i32, %arg1: i32) -> (i32, i32) {
    %c0_i32 = arith.constant 0 : i32
    %c0_i32_0 = arith.constant 0 : i32
    return %arg0, %c0_i32 : i32, i32
  }
}

module attributes {stable_mosaic.version = 11 : i64} {
  func.func @_rmsnorm_kernel(%arg0: i32, %arg1: memref<16x128xbf16, #tpu.memory_space<vmem>>, %arg2: memref<1x128xbf16, #tpu.memory_space<vmem>>, %arg3: memref<16x128xbf16, #tpu.memory_space<vmem>>) attributes {dimension_semantics = [#tpu.dimension_semantics<parallel>], iteration_bounds = array<i64: 1>, scalar_prefetch = 0 : i64, scratch_operands = 0 : i64, tpu.core_type = #tpu.core_type<tc>, window_params = [{transform_indices = @transform_0, window_bounds = array<i64: 16, 128>}, {pipeline_mode = #tpu.pipeline_mode<synchronous>, transform_indices = @transform_1, window_bounds = array<i64: 1, 128>}, {transform_indices = @transform_2, window_bounds = array<i64: 16, 128>}]} {
    %c0 = arith.constant 0 : index
    %c0_0 = arith.constant 0 : index
    %0 = vector.load %arg1[%c0, %c0_0] : memref<16x128xbf16, #tpu.memory_space<vmem>>, vector<16x128xbf16>
    %1 = arith.extf %0 : vector<16x128xbf16> to vector<16x128xf32>
    %2 = arith.mulf %1, %1 : vector<16x128xf32>
    %cst = arith.constant dense<0.000000e+00> : vector<16xf32>
    %3 = vector.multi_reduction <add>, %2, %cst [1] : vector<16x128xf32> to vector<16xf32>
    %4 = vector.shape_cast %3 : vector<16xf32> to vector<16x1xf32>
    %cst_1 = arith.constant 1.280000e+02 : f32
    %5 = vector.broadcast %cst_1 : f32 to vector<16x1xf32>
    %6 = arith.divf %4, %5 : vector<16x1xf32>
    %cst_2 = arith.constant 9.99999974E-6 : f32
    %7 = vector.broadcast %cst_2 : f32 to vector<16x1xf32>
    %8 = arith.addf %6, %7 : vector<16x1xf32>
    %9 = math.rsqrt %8 : vector<16x1xf32>
    %10 = vector.broadcast %9 : vector<16x1xf32> to vector<16x128xf32>
    %11 = arith.mulf %1, %10 : vector<16x128xf32>
    %12 = arith.truncf %11 : vector<16x128xf32> to vector<16x128xbf16>
    %c0_3 = arith.constant 0 : index
    %c0_4 = arith.constant 0 : index
    %13 = vector.load %arg2[%c0_3, %c0_4] : memref<1x128xbf16, #tpu.memory_space<vmem>>, vector<1x128xbf16>
    %14 = vector.broadcast %13 : vector<1x128xbf16> to vector<16x128xbf16>
    %15 = arith.mulf %14, %12 : vector<16x128xbf16>
    %c0_5 = arith.constant 0 : index
    %c0_6 = arith.constant 0 : index
    %16 = vector.load %arg3[%c0_5, %c0_6] : memref<16x128xbf16, #tpu.memory_space<vmem>>, vector<16x128xbf16>
    tpu.vector_store %arg3[%c0_5, %c0_6], %15 {strides = array<i32>} : memref<16x128xbf16, #tpu.memory_space<vmem>>, vector<16x128xbf16>,
    return
  }
  func.func @transform_0(%arg0: i32) -> (i32, i32) {
    %c0_i32 = arith.constant 0 : i32
    %c0_i32_0 = arith.constant 0 : i32
    return %arg0, %c0_i32 : i32, i32
  }
  func.func @transform_1(%arg0: i32) -> (i32, i32) {
    %c0_i32 = arith.constant 0 : i32
    %c0_i32_0 = arith.constant 0 : i32
    %c0_i32_1 = arith.constant 0 : i32
    return %c0_i32, %c0_i32_0 : i32, i32
  }
  func.func @transform_2(%arg0: i32) -> (i32, i32) {
    %c0_i32 = arith.constant 0 : i32
    %c0_i32_0 = arith.constant 0 : i32
    return %arg0, %c0_i32 : i32, i32
  }
}

module attributes {stable_mosaic.version = 11 : i64} {
  func.func @_matmul_kernel(%arg0: i32, %arg1: i32, %arg2: i32, %arg3: memref<32x128xbf16, #tpu.memory_space<vmem>>, %arg4: memref<128x256xbf16, #tpu.memory_space<vmem>>, %arg5: memref<32x256xf32, #tpu.memory_space<vmem>>, %arg6: memref<32x256xf32, #tpu.memory_space<vmem>>) attributes {dimension_semantics = [#tpu.dimension_semantics<parallel>, #tpu.dimension_semantics<parallel>, #tpu.dimension_semantics<arbitrary>], iteration_bounds = array<i64: 1, 1, 1>, scalar_prefetch = 0 : i64, scratch_operands = 1 : i64, tpu.core_type = #tpu.core_type<tc>, window_params = [{transform_indices = @transform_0, window_bounds = array<i64: 32, 128>}, {transform_indices = @transform_1, window_bounds = array<i64: 128, 256>}, {transform_indices = @transform_2, window_bounds = array<i64: 32, 256>}]} {
    %c0_i32 = arith.constant 0 : i32
    %0 = arith.cmpi eq, %arg2, %c0_i32 : i32
    %1 = arith.extui %0 : i1 to i32
    %c0_i32_0 = arith.constant 0 : i32
    %2 = arith.cmpi ne, %1, %c0_i32_0 : i32
    scf.if %2 {
      %cst_10 = arith.constant 0.000000e+00 : f32
      %12 = vector.broadcast %cst_10 : f32 to vector<32x256xf32>
      %c0_11 = arith.constant 0 : index
      %c0_12 = arith.constant 0 : index
      %13 = vector.load %arg6[%c0_11, %c0_12] : memref<32x256xf32, #tpu.memory_space<vmem>>, vector<32x256xf32>
      tpu.vector_store %arg6[%c0_11, %c0_12], %12 {strides = array<i32>} : memref<32x256xf32, #tpu.memory_space<vmem>>, vector<32x256xf32>,
    } else {
    }
    %c0 = arith.constant 0 : index
    %c0_1 = arith.constant 0 : index
    %3 = vector.load %arg6[%c0, %c0_1] : memref<32x256xf32, #tpu.memory_space<vmem>>, vector<32x256xf32>
    %c0_2 = arith.constant 0 : index
    %c0_3 = arith.constant 0 : index
    %4 = vector.load %arg3[%c0_2, %c0_3] : memref<32x128xbf16, #tpu.memory_space<vmem>>, vector<32x128xbf16>
    %c0_4 = arith.constant 0 : index
    %c0_5 = arith.constant 0 : index
    %5 = vector.load %arg4[%c0_4, %c0_5] : memref<128x256xbf16, #tpu.memory_space<vmem>>, vector<128x256xbf16>
    %cst = arith.constant dense<0.000000e+00> : vector<32x256xf32>
    %6 = tpu.matmul %4, %5, %cst {dimension_numbers = #tpu.dot_dimension_numbers<[1], [0], [0], [1], [0, 0, 1, 1], [], []>} : vector<32x128xbf16>, vector<128x256xbf16>, vector<32x256xf32> -> vector<32x256xf32>
    %7 = arith.addf %3, %6 : vector<32x256xf32>
    %c0_6 = arith.constant 0 : index
    %c0_7 = arith.constant 0 : index
    %8 = vector.load %arg6[%c0_6, %c0_7] : memref<32x256xf32, #tpu.memory_space<vmem>>, vector<32x256xf32>
    tpu.vector_store %arg6[%c0_6, %c0_7], %7 {strides = array<i32>} : memref<32x256xf32, #tpu.memory_space<vmem>>, vector<32x256xf32>,
    %c0_i32_8 = arith.constant 0 : i32
    %9 = arith.cmpi eq, %arg2, %c0_i32_8 : i32
    %10 = arith.extui %9 : i1 to i32
    %c0_i32_9 = arith.constant 0 : i32
    %11 = arith.cmpi ne, %10, %c0_i32_9 : i32
    scf.if %11 {
      %c0_10 = arith.constant 0 : index
      %c0_11 = arith.constant 0 : index
      %12 = vector.load %arg6[%c0_10, %c0_11] : memref<32x256xf32, #tpu.memory_space<vmem>>, vector<32x256xf32>
      %c0_12 = arith.constant 0 : index
      %c0_13 = arith.constant 0 : index
      %13 = vector.load %arg5[%c0_12, %c0_13] : memref<32x256xf32, #tpu.memory_space<vmem>>, vector<32x256xf32>
      tpu.vector_store %arg5[%c0_12, %c0_13], %12 {strides = array<i32>} : memref<32x256xf32, #tpu.memory_space<vmem>>, vector<32x256xf32>,
    } else {
    }
    return
  }
  func.func @transform_0(%arg0: i32, %arg1: i32, %arg2: i32) -> (i32, i32) {
    %c0_i32 = arith.constant 0 : i32
    return %arg0, %arg2 : i32, i32
  }
  func.func @transform_1(%arg0: i32, %arg1: i32, %arg2: i32) -> (i32, i32) {
    %c0_i32 = arith.constant 0 : i32
    return %arg2, %arg1 : i32, i32
  }
  func.func @transform_2(%arg0: i32, %arg1: i32, %arg2: i32) -> (i32, i32) {
    %c0_i32 = arith.constant 0 : i32
    return %arg0, %arg1 : i32, i32
  }
}

</mosaic_0001>

<bundles_post_ra>
// kernel: _lambda_.15
= control target key start
LH: loop header
LB: loop body
LE: loop exit
PB: predicated region body
PF: predicated region fallthrough
CT: control target
= control target key end

     0   :  { %s827_s12 = smov 0   ;;  %s829_s13 = smov 0   ;;  %s971_s0 = inlined_call_operand.vmem [shape: bf16[16,128], index: 0, kind: input, shape index: {}]   ;;  %s972_s1 = inlined_call_operand.vmem [shape: bf16[1,128], index: 1, kind: input, shape index: {}]   ;;  %s973_s2 = inlined_call_operand.vmem [shape: bf16[128,512], index: 2, kind: input, shape index: {}]   ;;  %s974_s3 = inlined_call_operand.vmem [shape: bf16[16,512], index: 3, kind: output, shape index: {}]  }
   0x1   :  { %s831_s14 = smov 0   ;;  %s833_s15 = smov 0  }
   0x2   :  { %s835_s16 = smov 0  }
   0x3 LB: > { %s22_s17 = sadd.s32 1, %s800_s15  ;;  %s617_s18 = sadd.s32 4294967295, %s804_s16   ;;  %s804_s16 = sphi %s835_s16, %s13_s16   ;;  %s800_s15 = sphi %s833_s15, %s979_s15   ;;  %s796_s14 = sphi %s831_s14, %s978_s14   ;;  %s792_s13 = sphi %s829_s13, %s977_s13   ;;  %s788_s12 = sphi %s827_s12, %s976_s12  }
   0x4   : > { %p23_p0 = scmp.ge.s32.totalorder %s22_s17, 2  ;;  %p86_p1 = scmp.ne.s32.totalorder %s792_s13, %s788_s12 }
   0x5   : > { %p87_p2 = scmp.eq.s32.totalorder %s804_s16, 0  ;;  %p118_p4 = scmp.eq.s32.totalorder %s617_s18, 1 }
   0x6   : > { %s981_s17 = smov (%p23_p0, %s22_s17), 0  ;;  %s79_s20 = sadd.s32 1, %s792_s13 }
   0x7   : > { %p88_p3 = por %p87_p2, %p86_p1  ;;  %s76_s19 = ssub.s32 %s800_s15, %s981_s17 }
   0x8   : > { %p77_p5 = scmp.eq.s32.totalorder %s76_s19, 0  ;;  %p862_p6 = por %p118_p4, %p86_p1 }
   0x9   : > { %p621_p7 = scmp.ge.s32.totalorder %s804_s16, 2 }
   0xa   : > { %s867_s22 = scalar_select %p77_p5, %s792_s13, %s79_s20  }
   0xb   : > { %152 = sbr.rel (%p621_p7) target bundleno = 36 (0x24), region = 24 }
  0x10   : > { %155 = sbr.rel (!%p88_p3) target bundleno = 36 (0x24), region = 28  ;;  %s157_s23 = sand.u32 (%p88_p3), 1, %s792_s13  }
  0x11   : > { %s697_s24 = sshll.u32 (%p88_p3), %s800_s15, 3  ;;  %s622_s25 = sshll.u32 (%p88_p3), %s157_s23, 7 }
  0x12   : > { %s875_s28 = scalar_lea.vmem (%p88_p3), %s973_s2, %s697_s24  ;;  %s159_s29 = scalar_lea.vmem (%p88_p3), [#allocation2], %s622_s25 }
  0x13   : > { %v221_v0 = vld [vmem:[%s875_s28] sm:$0xff] (%p88_p3)  ;;  %v223_v1 = vld [vmem:[%s875_s28 + $0x10] sm:$0xff] (%p88_p3) }
  0x14   : > { %v225_v2 = vld [vmem:[%s875_s28 + $0x20] sm:$0xff] (%p88_p3)  ;;  %222 = vst [vmem:[%s159_s29] sm:$0xff] (%p88_p3), %v221_v0  ;;  %v227_v3 = vld [vmem:[%s875_s28 + $0x30] sm:$0xff] (%p88_p3) }
  0x15   : > { %224 = vst [vmem:[%s159_s29 + $0x8] sm:$0xff] %v223_v1  ;;  %v229_v4 = vld [vmem:[%s875_s28 + $0x40] sm:$0xff]  ;;  %v231_v5 = vld [vmem:[%s875_s28 + $0x50] sm:$0xff] }
  0x16   : > { %226 = vst [vmem:[%s159_s29 + $0x10] sm:$0xff] %v225_v2  ;;  %v233_v6 = vld [vmem:[%s875_s28 + $0x60] sm:$0xff]  ;;  %v235_v7 = vld [vmem:[%s875_s28 + $0x70] sm:$0xff] }
  0x17   : > { %228 = vst [vmem:[%s159_s29 + $0x18] sm:$0xff] %v227_v3  ;;  %v237_v8 = vld [vmem:[%s875_s28 + $0x80] sm:$0xff]  ;;  %v239_v9 = vld [vmem:[%s875_s28 + $0x90] sm:$0xff] }
  0x18   : > { %230 = vst [vmem:[%s159_s29 + $0x20] sm:$0xff] %v229_v4  ;;  %v241_v10 = vld [vmem:[%s875_s28 + $0xa0] sm:$0xff]  ;;  %v243_v11 = vld [vmem:[%s875_s28 + $0xb0] sm:$0xff] }
  0x19   : > { %232 = vst [vmem:[%s159_s29 + $0x28] sm:$0xff] %v231_v5  ;;  %v245_v12 = vld [vmem:[%s875_s28 + $0xc0] sm:$0xff]  ;;  %v247_v13 = vld [vmem:[%s875_s28 + $0xd0] sm:$0xff] }
  0x1a   : > { %234 = vst [vmem:[%s159_s29 + $0x30] sm:$0xff] %v233_v6  ;;  %v249_v14 = vld [vmem:[%s875_s28 + $0xe0] sm:$0xff]  ;;  %v251_v15 = vld [vmem:[%s875_s28 + $0xf0] sm:$0xff] }
  0x1b   : > { %236 = vst [vmem:[%s159_s29 + $0x38] sm:$0xff] %v235_v7 }
  0x1c   : > { %238 = vst [vmem:[%s159_s29 + $0x40] sm:$0xff] %v237_v8 }
  0x1d   : > { %240 = vst [vmem:[%s159_s29 + $0x48] sm:$0xff] %v239_v9 }
  0x1e   : > { %242 = vst [vmem:[%s159_s29 + $0x50] sm:$0xff] %v241_v10 }
  0x1f   : > { %244 = vst [vmem:[%s159_s29 + $0x58] sm:$0xff] %v243_v11 }
  0x20   : > { %246 = vst [vmem:[%s159_s29 + $0x60] sm:$0xff] %v245_v12 }
  0x21   : > { %248 = vst [vmem:[%s159_s29 + $0x68] sm:$0xff] %v247_v13 }
  0x22   : > { %250 = vst [vmem:[%s159_s29 + $0x70] sm:$0xff] %v249_v14 }
  0x23   : > { %252 = vst [vmem:[%s159_s29 + $0x78] sm:$0xff] %v251_v15 }
  0x24 PF: > { %p625_p8 = scmp.ge.s32.totalorder %s804_s16, 1  ;;  %p257_p9 = scmp.lt.s32.totalorder %s804_s16, 3 }
  0x26   : > { %p258_p10 = pnand %p625_p8, %p257_p9 }
  0x27   : > { %s264_s5 = sand.u32 (!%p258_p10), 1, %s788_s12  }
  0x28   : > { %261 = sbr.rel (%p258_p10) target bundleno = 351 (0x15f), region = 66  ;;  %s626_s6 = sshll.u32 (!%p258_p10), %s264_s5, 7 }
  0x29   : > { %s909_s7 = scalar_lea.vmem (!%p258_p10), [#allocation2], %s626_s6  ;;  %s627_s10 = sshll.u32 (!%p258_p10), %s264_s5, 4 }
  0x2a   : > { %s290_s11 = scalar_lea.vmem (!%p258_p10), [#allocation3], %s627_s10 }
  0x2d   : > { %v716_v16 = vld [vmem:[%s971_s0] sm:$0xff]   ;;  %v806_v21 = vmov 128.0   ;;  %v686_v22 = vld [vmem:[%s909_s7 + $0x70] sm:$0xf]  ;;  %v713_v23 = vld [vmem:[%s909_s7 + $0x74] sm:$0xf0] }
  0x2e   : > { %v898_v17 = vunpack.c.l.bf16 %v716_v16  ;;  %v902_v19 = vunpack.c.h.bf16 %v716_v16  ;;  %760 = vrcp.f32 %v806_v21  ;;  %v712_v24 = vld [vmem:[%s909_s7 + $0x74] sm:$0xf]  ;;  %v687_v25 = vor.u32 %v713_v23, %v686_v22  ;;  %v688_v26 = vld [vmem:[%s909_s7 + $0x78] sm:$0xf0]  ;;  %v678_v29 = vld [vmem:[%s909_s7 + $0x60] sm:$0xf] }
  0x2f   : > { %v691_v27 = vor.u32 %v712_v24, %v688_v26  ;;  %v711_v30 = vld [vmem:[%s909_s7 + $0x64] sm:$0xf0]  ;;  %v710_v31 = vld [vmem:[%s909_s7 + $0x64] sm:$0xf]  ;;  %v680_v33 = vld [vmem:[%s909_s7 + $0x68] sm:$0xf0] }
  0x30   : > { %v304_v18 = vmul.f32 %v898_v17, %v898_v17  ;;  %v305_v20 = vmul.f32 %v902_v19, %v902_v19  ;;  %452 = vmatpush.bf16.msra.mxu0 %v687_v25  ;;  %v679_v32 = vor.u32 %v711_v30, %v678_v29  ;;  %v683_v34 = vor.u32 %v710_v31, %v680_v33  ;;  %v670_v36 = vld [vmem:[%s909_s7 + $0x50] sm:$0xf]  ;;  %v709_v37 = vld [vmem:[%s909_s7 + $0x54] sm:$0xf0]  ;;  %v708_v38 = vld [vmem:[%s909_s7 + $0x54] sm:$0xf] }
  0x31   : > { %466 = vmatpush.bf16.msra.mxu1 %v691_v27  ;;  %v671_v39 = vor.u32 %v709_v37, %v670_v36  ;;  %v672_v40 = vld [vmem:[%s909_s7 + $0x58] sm:$0xf0]  ;;  %v662_v43 = vld [vmem:[%s909_s7 + $0x40] sm:$0xf]  ;;  %v707_v44 = vld [vmem:[%s909_s7 + $0x44] sm:$0xf0] }
  0x32   : > { %306 = vadd.xlane.f32.xlu0 %v304_v18  ;;  %v675_v41 = vor.u32 %v708_v38, %v672_v40  ;;  %v706_v45 = vld [vmem:[%s909_s7 + $0x44] sm:$0xf]  ;;  %v663_v46 = vor.u32 %v707_v44, %v662_v43  ;;  %v664_v47 = vld [vmem:[%s909_s7 + $0x48] sm:$0xf0]  ;;  %v654_v50 = vld [vmem:[%s909_s7 + $0x30] sm:$0xf] }
  0x33   : > { %v667_v48 = vor.u32 %v706_v45, %v664_v47  ;;  %v705_v51 = vld [vmem:[%s909_s7 + $0x34] sm:$0xf0]  ;;  %v704_v52 = vld [vmem:[%s909_s7 + $0x34] sm:$0xf]  ;;  %v656_v54 = vld [vmem:[%s909_s7 + $0x38] sm:$0xf0] }
  0x34   : > { %v761_v28 = vpop.eup %760  ;;  %453 = vmatpush.bf16.msra.mxu0 %v679_v32  ;;  %v655_v53 = vor.u32 %v705_v51, %v654_v50  ;;  %v659_v55 = vor.u32 %v704_v52, %v656_v54  ;;  %v646_v57 = vld [vmem:[%s909_s7 + $0x20] sm:$0xf]  ;;  %v703_v58 = vld [vmem:[%s909_s7 + $0x24] sm:$0xf0]  ;;  %v702_v59 = vld [vmem:[%s909_s7 + $0x24] sm:$0xf] }
  0x35   : > { %v311_v35 = vmul.f32 128.0, %v761_v28  ;;  %467 = vmatpush.bf16.msra.mxu1 %v683_v34  ;;  %vm315_vm0 = vweird.f32 %v761_v28  ;;  %v647_v60 = vor.u32 %v703_v58, %v646_v57  ;;  %v648_v61 = vld [vmem:[%s909_s7 + $0x28] sm:$0xf0]  ;;  %v638_v62 = vld [vmem:[%s909_s7 + $0x10] sm:$0xf]  ;;  %s714_s18 = sshll.u32 (%p862_p6), %s796_s14, 3 }
  0x36   : > { %v701_v63 = vld [vmem:[%s909_s7 + $0x14] sm:$0xf0]  ;;  %v651_v0 = vor.u32 %v702_v59, %v648_v61  ;;  %v700_v1 = vld [vmem:[%s909_s7 + $0x14] sm:$0xf]  ;;  %v640_v2 = vld [vmem:[%s909_s7 + $0x18] sm:$0xf0]  ;;  %s496_s12 = scalar_lea.vmem (%p862_p6), %s974_s3, %s714_s18 }
  0x37   : > { %v312_v42 = vsub.f32 1.0, %v311_v35  ;;  %v639_v4 = vor.u32 %v701_v63, %v638_v62  ;;  %v643_v5 = vor.u32 %v700_v1, %v640_v2  ;;  %v630_v6 = vld [vmem:[%s909_s7] sm:$0xf]  ;;  %v699_v7 = vld [vmem:[%s909_s7 + $0x4] sm:$0xf0] }
  0x38   : > { %454 = vmatpush.bf16.msra.mxu0 %v671_v39  ;;  %v698_v9 = vld [vmem:[%s909_s7 + $0x4] sm:$0xf]  ;;  %v632_v10 = vld [vmem:[%s909_s7 + $0x8] sm:$0xf0]  ;;  %v631_v12 = vor.u32 %v699_v7, %v630_v6  ;;  %v345_v30 = vld [vmem:[%s972_s1] sm:$0x1] }
  0x39   : > { %468 = vmatpush.bf16.msra.mxu1 %v675_v41  ;;  %v313_v49 = vmul.f32 %v761_v28, %v312_v42  ;;  %v635_v14 = vor.u32 %v698_v9, %v632_v10  ;;  %v347_v33 = vpack.i.b16 %v345_v30, %v345_v30 }
  0x3a   : > { %308 = vadd.xlane.f32.xlu0 %v305_v20 }
  0x3b   : > { %v314_v56 = vadd.f32 %v761_v28, %v313_v49  ;;  %v349_v37 = vperm.slane %v347_v33, 0 }
  0x3c   : > { %455 = vmatpush.bf16.msra.mxu0 %v663_v46 }
  0x3d   : > { %469 = vmatpush.bf16.msra.mxu1 %v667_v48  ;;  %v316_v3 = vsel %vm315_vm0, %v761_v28, %v314_v56  ;;  %v352_v42 = vunpack.c.l.bf16 %v349_v37 }
  0x40   : > { %456 = vmatpush.bf16.msra.mxu0 %v655_v53 }
  0x41   : > { %470 = vmatpush.bf16.msra.mxu1 %v659_v55 }
  0x44   : > { %457 = vmatpush.bf16.msra.mxu0 %v647_v60 }
  0x45   : > { %471 = vmatpush.bf16.msra.mxu1 %v651_v0 }
  0x48   : > { %458 = vmatpush.bf16.msra.mxu0 %v639_v4 }
  0x49   : > { %472 = vmatpush.bf16.msra.mxu1 %v643_v5 }
  0x4c   : > { %459 = vmatpush.bf16.msra.mxu0 %v631_v12 }
  0x4d   : > { %473 = vmatpush.bf16.msra.mxu1 %v635_v14 }
  0xa5   : > { %v307_v8 = vpop.xlane.xlu0 %306 }
  0xa6   : > { %v317_v11 = vmul.f32 %v316_v3, %v307_v8 }
  0xa8   : > { %v319_v13 = vadd.f32 1e-05, %v317_v11 }
  0xaa   : > { %762 = vrsqrt.f32 %v319_v13  ;;  %vm327_vm2 = vweird.f32 %v319_v13 }
  0xad   : > { %v309_v15 = vpop.xlane.xlu0 %308 }
  0xae   : > { %v318_v16 = vmul.f32 %v316_v3, %v309_v15 }
  0xb0   : > { %v763_v18 = vpop.eup %762  ;;  %v320_v20 = vadd.f32 1e-05, %v318_v16 }
  0xb1   : > { %v322_v21 = vmul.f32 %v763_v18, %v319_v13  ;;  %vm328_vm1 = vweird.f32 %v763_v18 }
  0xb2   : > { %764 = vrsqrt.f32 %v320_v20  ;;  %vm329_vm3 = vmor %vm327_vm2, %vm328_vm1  ;;  %vm337_vm5 = vweird.f32 %v320_v20 }
  0xb3   : > { %v323_v22 = vmul.f32 %v763_v18, %v322_v21 }
  0xb5   : > { %v324_v23 = vmul.f32 0.5, %v323_v22 }
  0xb7   : > { %v325_v24 = vsub.f32 1.5, %v324_v23 }
  0xb8   : > { %v765_v25 = vpop.eup %764 }
  0xb9   : > { %v326_v26 = vmul.f32 %v763_v18, %v325_v24  ;;  %v332_v27 = vmul.f32 %v765_v25, %v320_v20  ;;  %vm338_vm4 = vweird.f32 %v765_v25 }
  0xba   : > { %vm339_vm6 = vmor %vm337_vm5, %vm338_vm4 }
  0xbb   : > { %v333_v28 = vmul.f32 %v765_v25, %v332_v27  ;;  %v330_v29 = vsel %vm329_vm3, %v763_v18, %v326_v26 }
  0xbc   : > { %v341_v32 = vmul.f32 %v898_v17, %v330_v29 }
  0xbd   : > { %v334_v31 = vmul.f32 0.5, %v333_v28 }
  0xbe   : > { %v343_v36 = vpack.c.bf16 %v341_v32, %v341_v32 }
  0xbf   : > { %v335_v34 = vsub.f32 1.5, %v334_v31 }
  0xc0   : > { %v350_v41 = vunpack.c.l.bf16 %v343_v36 }
  0xc1   : > { %v336_v35 = vmul.f32 %v765_v25, %v335_v34 }
  0xc2   : > { %v353_v44 = vmul.f32 %v352_v42, %v350_v41 }
  0xc3   : > { %v340_v38 = vsel %vm339_vm6, %v765_v25, %v336_v35 }
  0xc4   : > { %v342_v39 = vmul.f32 %v902_v19, %v340_v38 }
  0xc6   : > { %v344_v40 = vpack.c.bf16 %v342_v39, %v342_v39 }
  0xc8   : > { %v351_v43 = vunpack.c.l.bf16 %v344_v40 }
  0xca   : > { %v354_v45 = vmul.f32 %v352_v42, %v351_v43 }
  0xcc   : > { %v355_v46 = vpack.c.bf16 %v354_v45, %v353_v44 }
  0xce   : > { %460 = vmatmul.bf16.vlgmr.msra.gmra.mxu0 %v355_v46  ;;  %474 = vmatmul.bf16.vlgmr.msra.gmra.mxu1 %v355_v46 }
 0x14b   : > { %v461_v17 = vpop.f32.mrf.mxu0  ;;  %v475_v47 = vpop.f32.mrf.mxu1 }
 0x14c   : > { %v480_v48 = vpack.c.bf16 %v475_v47, %v461_v17 }
 0x14e   : > { %482 = vst [vmem:[%s290_s11] sm:$0xff] %v480_v48 }
 0x152   : > { %490 = sbr.rel (!%p862_p6) target bundleno = 351 (0x15f), region = 74 }
 0x153   : > { %v463_v49 = vpop.f32.mrf.mxu0  ;;  %v477_v50 = vpop.f32.mrf.mxu1 }
 0x154   : > { %v481_v51 = vpack.c.bf16 %v477_v50, %v463_v49 }
 0x155   : > { %v527_v19 = vld [vmem:[%s290_s11] sm:$0xff] (%p862_p6) }
 0x156   : > { %483 = vst [vmem:[%s290_s11 + $0x8] sm:$0xff] %v481_v51 }
 0x157   : > { %528 = vst [vmem:[%s496_s12] sm:$0xff] %v527_v19 }
 0x15d   : > { %v529_v52 = vld [vmem:[%s290_s11 + $0x8] sm:$0xff] }
 0x15e   : > { %530 = vst [vmem:[%s496_s12 + $0x10] sm:$0xff] %v529_v52 }
 0x15f PF: > { %s13_s16 = sadd.s32 1, %s804_s16   ;;  %s976_s12 = smov %s792_s13 }
 0x160   : > { %p10_p11 = scmp.ge.s32.totalorder %s13_s16, 4   ;;  %s977_s13 = smov %s867_s22 }
 0x161   : > { %s978_s14 = smov %s800_s15  ;;  %s979_s15 = smov %s981_s17 }
 0x162   :  { %12 = sbr.rel (!%p10_p11) target bundleno = 3 (0x3), region = 146 }

// kernel: _lambda_.17
= control target key start
LH: loop header
LB: loop body
LE: loop exit
PB: predicated region body
PF: predicated region fallthrough
CT: control target
= control target key end

     0   :  { %s238_s1 = inlined_call_operand.vmem [shape: bf16[128,128], index: 1, kind: input, shape index: {}]   ;;  %s239_s0 = inlined_call_operand.vmem [shape: bf16[16,128], index: 0, kind: input, shape index: {}]   ;;  %s240_s2 = inlined_call_operand.vmem [shape: bf16[16,128], index: 2, kind: input, shape index: {}]   ;;  %s241_s3 = inlined_call_operand.vmem [shape: bf16[16,128], index: 3, kind: output, shape index: {}]  }
   0x1   :  { %v175_v0 = vld [vmem:[%s238_s1 + $0x38] sm:$0xff]  ;;  %v174_v1 = vld [vmem:[%s238_s1 + $0x30] sm:$0xff]  ;;  %v173_v2 = vld [vmem:[%s238_s1 + $0x28] sm:$0xff] }
   0x2   :  { %94 = vmatpush.bf16.msra.mxu0 %v175_v0  ;;  %v172_v3 = vld [vmem:[%s238_s1 + $0x20] sm:$0xff]  ;;  %v171_v4 = vld [vmem:[%s238_s1 + $0x18] sm:$0xff]  ;;  %v170_v5 = vld [vmem:[%s238_s1 + $0x10] sm:$0xff] }
   0x3   :  { %v169_v6 = vld [vmem:[%s238_s1 + $0x8] sm:$0xff]  ;;  %v168_v7 = vld [vmem:[%s238_s1] sm:$0xff] }
   0x4   :  { %v167_v8 = vld [vmem:[%s239_s0] sm:$0xff] }
   0x5   :  { %v177_v10 = vld [vmem:[%s240_s2] sm:$0xff]  }
   0x6   :  { %95 = vmatpush.bf16.msra.mxu0 %v174_v1  ;;  %v178_v11 = vunpack.c.l.bf16 %v177_v10  ;;  %v179_v12 = vunpack.c.h.bf16 %v177_v10 }
   0xa   :  { %96 = vmatpush.bf16.msra.mxu0 %v173_v2 }
   0xe   :  { %97 = vmatpush.bf16.msra.mxu0 %v172_v3 }
  0x12   :  { %98 = vmatpush.bf16.msra.mxu0 %v171_v4 }
  0x16   :  { %99 = vmatpush.bf16.msra.mxu0 %v170_v5 }
  0x1a   :  { %100 = vmatpush.bf16.msra.mxu0 %v169_v6 }
  0x1e   :  { %101 = vmatpush.bf16.msra.mxu0 %v168_v7 }
  0x21   :  { %102 = vmatmul.bf16.vlgmr.msra.gmra.mxu0 %v167_v8 }
  0x9e   :  { %v103_v9 = vpop.f32.mrf.mxu0 }
  0x9f   :  { %v121_v14 = vadd.f32 %v178_v11, %v103_v9 }
  0xa6   :  { %v105_v13 = vpop.f32.mrf.mxu0 }
  0xa7   :  { %v122_v15 = vadd.f32 %v179_v12, %v105_v13 }
  0xa9   :  { %v183_v16 = vpack.c.bf16 %v122_v15, %v121_v14 }
  0xab   :  { %184 = vst [vmem:[%s241_s3] sm:$0xff] %v183_v16  }

// kernel: _lambda_.16
= control target key start
LH: loop header
LB: loop body
LE: loop exit
PB: predicated region body
PF: predicated region fallthrough
CT: control target
= control target key end

     0   :  { %10 = vsyncpa [#allocation3], 0  ;;  %s790_s18 = smov 0   ;;  %s892_s0 = inlined_call_operand.vmem [shape: bf16[2,8,386], index: 0, kind: input, shape index: {}]   ;;  %s893_s1 = inlined_call_operand.vmem [shape: f32[4,256], index: 1, kind: input, shape index: {}]   ;;  %s894_s2 = inlined_call_operand.vmem [shape: f32[1,256], index: 2, kind: input, shape index: {}]   ;;  %s895_s3 = inlined_call_operand.vmem [shape: f32[1,128], index: 3, kind: input, shape index: {}]   ;;  %s896_s4 = inlined_call_operand.vmem [shape: f32[1,2], index: 4, kind: input, shape index: {}]   ;;  %s897_s5 = inlined_call_operand.vmem [shape: bf16[2,8,128], index: 5, kind: output, shape index: {}]  }
   0x1 LB: > { %s664_s19 = sadd.s32 4294967295, %s754_s18   ;;  %p666_p0 = scmp.ge.s32.totalorder %s754_s18, 1  ;;  %s754_s18 = sphi %s790_s18, %s16_s18  }
   0x2   : > { %p157_p1 = scmp.lt.s32.totalorder %s754_s18, 3  ;;  %s178_s22 = sshll.u32 %s896_s4, 4  ;;  %s179_s22 = int_to_ptr.vmem [resolvable:$true] %s178_s22 }
   0x3   : > { %p696_p3 = scmp.eq.s32.totalorder %s664_s19, 0  ;;  %s756_s23 = smov [#allocation2]  }
   0x4   : > { %p158_p2 = pnand %p666_p0, %p157_p1 }
   0x6   : > { %p692_p4 = pneg %p158_p2  ;;  %199 = sbr.rel (%p158_p2) target bundleno = 675 (0x2a3), region = 40 }
   0x8   : > { %p693_p5 = pnand %p696_p3, %p692_p4 }
   0xa   : > { %695 = dma.vmem_to_smem (!%p693_p5), %s179_s22, 16, %s756_s23, [#allocation3]  }
   0xb   : > { %749 = dma.done.wait (%p696_p3), [#allocation3], 16  }
   0xc   : > { %751 = vsyncadd (%p696_p3), [#allocation3], 4294967280 }
   0xd   : > { %206 = sfence }
   0xe   : > { %p228_p6 = scmp.lt.s32.totalorder %s664_s19, 1  ;;  %v243_v0 = vlaneseq  ;;  %v820_v4 = vld [vmem:[%s893_s1] sm:$0xff]  ;;  %s757_s7 = smov 96   ;;  %v759_v46 = vmov 0.0   ;;  %vm337_vm6 = vcmask 64512   ;;  %vm426_vm7 = vcmask 261120  }
   0xf   : > { %v826_v7 = vld [vmem:[%s894_s2] sm:$0x3]  ;;  %v253_v8 = vperm.slane %v820_v4, 7  ;;  %v268_v9 = vperm.slane %v820_v4, 6  ;;  %v283_v10 = vperm.slane %v820_v4, 5  ;;  %v298_v11 = vperm.slane %v820_v4, 4 }
  0x10   : > { %s899_s19 = smov (!%p228_p6, %s664_s19), 1  ;;  %v803_v1 = vshrl.u32 %v243_v0, 7  ;;  %v248_v13 = vperm.slane %v826_v7, 1  ;;  %s758_s8 = smov 64   ;;  %v843_v39 = vand.u32 127, %v243_v0  ;;  %v252_v54 = vperm.slane %v820_v4, 3 }
  0x11   : > { %s687_s24 = sshll.u32 %s899_s19, 4  ;;  %v257_v14 = vperm.slane %v253_v8, 3  ;;  %v272_v16 = vperm.slane %v268_v9, 2  ;;  %v287_v18 = vperm.slane %v283_v10, 1  ;;  %v302_v22 = vperm.slane %v298_v11, 0  ;;  %s683_s11 = sld [smem:[#allocation2 + $0x1]] }
  0x12   : > { %711 = vset.pattern.permute.xlu0 %v803_v1  ;;  %710 = vset.pattern.permute.xlu2 %v803_v1  ;;  %s811_s27 = scalar_lea.vmem %s892_s0, %s687_s24  ;;  %vm264_vm0 = vcmp.ge.s32.totalorder %v803_v1, 1  ;;  %vm279_vm1 = vcmp.ge.s32.totalorder %v803_v1, 2  ;;  %vm294_vm2 = vcmp.ge.s32.totalorder %v803_v1, 3  ;;  %vm316_vm4 = vcmp.ge.s32.totalorder %v803_v1, %v843_v39  ;;  %s526_s12 = sld [smem:[#allocation2]] }
  0x13   : > { %v814_v2 = vld [vmem:[%s811_s27 + $0x4] sm:$0xff]  ;;  %v240_v3 = vld [vmem:[%s811_s27 + $0xc] sm:$0xf]  ;;  %v674_v47 = vsel %vm316_vm4, 1.0, %v759_v46  ;;  %v267_v55 = vperm.slane %v820_v4, 2  ;;  %v247_v56 = vperm.slane %v826_v7, 0 }
  0x14   : > { %v241_v5 = vunpack.c.l.bf16 %v240_v3  ;;  %v239_v6 = vunpack.c.h.bf16 %v814_v2  ;;  %v238_v53 = vunpack.c.l.bf16 %v814_v2  ;;  %v282_v57 = vperm.slane %v820_v4, 1  ;;  %s673_s13 = sshll.u32 %s899_s19, 2 }
  0x15   : > { %v297_v58 = vperm.slane %v820_v4, 0  ;;  %v256_v59 = vperm.slane %v252_v54, 3  ;;  %v271_v61 = vperm.slane %v267_v55, 2  ;;  %v530_v55 = vld [vmem:[%s811_s27] sm:$0xf]  ;;  %s236_s16 = scalar_lea.vmem %s897_s5, %s673_s13 }
  0x16   : > { %v322_v12 = vand.u32 2147483647, %v241_v5  ;;  %v263_v15 = vrot.slane %v239_v6, 7  ;;  %v278_v17 = vrot.slane %v239_v6, 6  ;;  %v259_v20 = vmul.f32 %v257_v14, %v239_v6 }
  0x17   : > { %v293_v21 = vrot.slane %v239_v6, 5  ;;  %v319_v42 = vmax.f32 %v241_v5, 0.0  ;;  %vm320_vm5 = vcmp.ne.f32.partialorder %v241_v5, %v241_v5  ;;  %v262_v60 = vrot.slane %v238_v53, 7 }
  0x18   : > { %v323_v19 = vsub.f32 0.0, %v322_v12  ;;  %v266_v23 = vsel %vm264_vm0, %v263_v15, 0.0  ;;  %v281_v24 = vsel %vm279_vm1, %v278_v17, 0.0  ;;  %v261_v26 = vadd.f32 %v259_v20, %v248_v13  ;;  %v564_v17 = vld [vmem:[%s811_s27] sm:$0xf] }
  0x19   : > { %v274_v27 = vmul.f32 %v272_v16, %v266_v23  ;;  %v289_v28 = vmul.f32 %v287_v18, %v281_v24  ;;  %v296_v29 = vsel %vm294_vm2, %v293_v21, 0.0  ;;  %v277_v62 = vrot.slane %v238_v53, 6  ;;  %v712_v18 = vld [vmem:[%s895_s3] ss:$0 sm:$0xff] }
  0x1a   : > { %v324_v25 = vmul.f32 1.442695, %v323_v19  ;;  %v304_v31 = vmul.f32 %v302_v22, %v296_v29  ;;  %v286_v63 = vperm.slane %v282_v57, 1  ;;  %v292_v0 = vrot.slane %v238_v53, 5 }
  0x1b   : > { %v276_v30 = vadd.f32 %v274_v27, %v261_v26  ;;  %v258_v3 = vmul.f32 %v256_v59, %v238_v53  ;;  %v265_v2 = vsel %vm264_vm0, %v262_v60, 0.0  ;;  %v301_v6 = vperm.slane %v297_v58, 0 }
  0x1c   : > { %713 = vpow2.f32 %v324_v25  ;;  %v273_v7 = vmul.f32 %v271_v61, %v265_v2  ;;  %v295_v8 = vsel %vm294_vm2, %v292_v0, 0.0  ;;  %v565_v19 = vunpack.c.l.bf16 %v564_v17 }
  0x1d   : > { %v291_v32 = vadd.f32 %v289_v28, %v276_v30  ;;  %v260_v4 = vadd.f32 %v258_v3, %v247_v56  ;;  %v303_v11 = vmul.f32 %v301_v6, %v295_v8  ;;  %v531_v56 = vunpack.c.l.bf16 %v530_v55 }
  0x1e   : > { %v566_v20 = vadd.f32 %v712_v18, %v565_v19  ;;  %v561_v61 = vstv %s683_s11  ;;  %vm558_vm0 = vcmask 519168  }
  0x1f   : > { %v306_v33 = vadd.f32 %v304_v31, %v291_v32  ;;  %v275_v10 = vadd.f32 %v273_v7, %v260_v4  ;;  %v535_v57 = vadd.f32 %v712_v18, %v531_v56 }
  0x20   : > { %v684_v21 = vmul.f32 -1.442695, %v566_v20 }
  0x21   : > { %312 = vrot.lane.b32.xlu0 %v306_v33, %s757_s7  ;;  %424 = vrot.lane.b32.xlu1 %v306_v33, %s758_s8  ;;  %v682_v58 = vmul.f32 -1.442695, %v535_v57 }
  0x22   : > { %v714_v34 = vpop.eup %713  ;;  %676 = vmatpush.xpose.msk.msra.mxu1 %vm426_vm7, %v306_v33 }
  0x23   : > { %v326_v35 = vadd.f32 1.0, %v714_v34  ;;  %v329_v36 = vmul.f32 -0.5, %v714_v34  ;;  %v332_v38 = vand.u32 2147483647, %v714_v34 }
  0x25   : > { %715 = vlog2.f32 %v326_v35  ;;  %v330_v37 = vadd.f32 1.0, %v329_v36  ;;  %vm333_vm3 = vcmp.lt.f32.partialorder %v332_v38, 0.0004427343 }
  0x26   : > { %717 = vpow2.f32 %v684_v21 }
  0x27   : > { %v331_v40 = vmul.f32 %v714_v34, %v330_v37 }
  0x2b   : > { %v716_v41 = vpop.eup %715 }
  0x2c   : > { %v328_v43 = vmul.f32 0.6931472, %v716_v41  ;;  %v718_v24 = vpop.eup %717 }
  0x2d   : > { %v570_v27 = vadd.f32 1.0, %v718_v24 }
  0x2e   : > { %v334_v44 = vsel %vm333_vm3, %v331_v40, %v328_v43 }
  0x2f   : > { %v335_v45 = vadd.f32 %v334_v44, %v319_v42  ;;  %719 = vrcp.f32 %v570_v27  ;;  %v582_v34 = vand.u32 2147483648, %v570_v27  ;;  %vm576_vm8 = vweird.f32 %v570_v27 }
  0x30   : > { %v580_v37 = vand.u32 2147483647, %v570_v27 }
  0x31   : > { %v336_v48 = vsel %vm320_vm5, %v241_v5, %v335_v45  ;;  %v280_v5 = vsel %vm279_vm1, %v277_v62, 0.0  ;;  %v583_v42 = vor.u32 1.1754944e-38, %v582_v34  ;;  %vm597_vm1 = vcmask 1043968  }
  0x32   : > { %356 = vmatpush.msra.mxu0 %v336_v48  ;;  %v288_v9 = vmul.f32 %v286_v63, %v280_v5  ;;  %vm581_vm11 = vcmp.eq.f32.partialorder %v580_v37, 8.507059e+37 }
  0x33   : > { %675 = vmatmul.msk.f32.vlgmr.msra.gmra.mxu0 %vm337_vm6, %v674_v47 }
  0x34   : > { %v290_v12 = vadd.f32 %v288_v9, %v275_v10 }
  0x35   : > { %v720_v32 = vpop.eup %719 }
  0x36   : > { %v864_v13 = vadd.f32 %v303_v11, %v290_v12  ;;  %v572_v33 = vmul.f32 %v720_v32, %v570_v27  ;;  %vm577_vm9 = vweird.f32 %v720_v32  ;;  %v527_v12 = vstv %s526_s12 }
  0x37   : > { %vm578_vm10 = vmor %vm576_vm8, %vm577_vm9 }
  0x38   : > { %497 = vmatpush.msra.mxu3 %v864_v13  ;;  %v573_v36 = vsub.f32 1.0, %v572_v33 }
  0x3a   : > { %v574_v40 = vmul.f32 %v720_v32, %v573_v36 }
  0x3c   : > { %v575_v43 = vadd.f32 %v720_v32, %v574_v40 }
  0x3e   : > { %v579_v44 = vsel %vm578_vm10, %v720_v32, %v575_v43 }
  0x3f   : > { %v584_v45 = vsel %vm581_vm11, %v583_v42, %v579_v44 }
  0x40   : > { %v586_v46 = vmul.f32 %v584_v45, %v566_v20 }
  0x93   : > { %v313_v49 = vpop.permute.xlu0 %312  ;;  %v425_v50 = vpop.permute.xlu1 %424 }
  0x94   : > { %678 = vmatpush.xpose.msk.msra.mxu2 %vm426_vm7, %v313_v49  ;;  %451 = vrot.lane.b32.xlu0 %v313_v49, %s758_s8 }
  0x95   : > { %677 = vmatmul.msk.f32.vlgmr.msra.gmra.mxu1 %vm426_vm7, %v425_v50 }
  0xb0   : > { %v358_v51 = vpop.f32.mrf.mxu0 }
  0xb1   : > { %361 = vxpose.xlu1.b32.start.end [1/1] (short) (narrow) %v358_v51, 8 }
 0x106   : > { %v452_v52 = vpop.permute.xlu0 %451 }
 0x107   : > { %679 = vmatmul.msk.f32.vlgmr.msra.gmra.mxu2 %vm426_vm7, %v452_v52 }
 0x112   : > { %v448_v53 = vpop.f32.mrf.mxu1 }
 0x155   : > { %v377_v14 = vpop.trf.xlu1 }
 0x156   : > { %v393_v15 = vperm.slane %v377_v14, 0  ;;  %v400_v16 = vperm.slane %v377_v14, 1  ;;  %v408_v22 = vrot.slane %v377_v14, 1 }
 0x158   : > { %405 = vperm.xlu2 %710, %v400_v16   ;;  %398 = vperm.xlu0 %711, %v393_v15   ;;  %v410_v23 = vperm.slane %v408_v22, 0 }
 0x160   : > { %308 = vrot.lane.b32.xlu2 %v864_v13, %s758_s8 }
 0x168   : > { %588 = vrot.lane.b32.xlu2 %v586_v46, %s758_s8 }
 0x18a   : > { %v474_v35 = vpop.f32.mrf.mxu2 }
 0x1b2   : > { %v406_v25 = vpop.permute.xlu2 %405 }
 0x1b3   : > { %v414_v26 = vsub.f32 %v406_v25, %v410_v23 }
 0x1b5   : > { %v416_v28 = vsub.f32 0.0, %v414_v26 }
 0x1b7   : > { %v419_v29 = vsel %vm316_vm4, %v416_v28, -inf }
 0x1b8   : > { %v422_v30 = vmul.f32 1.442695, %v419_v29 }
 0x1ba   : > { %721 = vpow2.f32 %v422_v30  ;;  %v309_v31 = vpop.permute.xlu2 %308 }
 0x1bb   : > { %520 = vmatpush.msrb.mxu0 %v309_v31  ;;  %v562_v62 = vmul.f32 %v561_v61, %v309_v31 }
 0x1c0   : > { %v722_v38 = vpop.eup %721 }
 0x1c1   : > { %v478_v41 = vmul.f32 %v722_v38, %v474_v35 }
 0x1c2   : > { %v589_v39 = vpop.permute.xlu2 %588 }
 0x1c3   : > { %681 = vmatmul.msk.f32.vlgmr.msrb.gmra.mxu0 %vm337_vm6, %v478_v41 }
 0x1ca   : > { %v399_v47 = vpop.permute.xlu0 %398 }
 0x1cb   : > { %v413_v48 = vsub.f32 %v399_v47, %v393_v15  ;;  %v528_v15 = vmul.f32 %v527_v12, %v864_v13 }
 0x1cd   : > { %v415_v49 = vsub.f32 0.0, %v413_v48 }
 0x1cf   : > { %v418_v50 = vsel %vm316_vm4, %v415_v49, -inf }
 0x1d0   : > { %v420_v51 = vmul.f32 1.442695, %v418_v50 }
 0x1d2   : > { %723 = vpow2.f32 %v420_v51 }
 0x1d3   : > { %725 = vpow2.f32 %v682_v58 }
 0x1d8   : > { %v724_v52 = vpop.eup %723 }
 0x1d9   : > { %v477_v54 = vmul.f32 %v724_v52, %v448_v53  ;;  %v726_v59 = vpop.eup %725 }
 0x1da   : > { %v539_v60 = vadd.f32 1.0, %v726_v59 }
 0x1db   : > { %680 = vmatmul.msk.f32.vlgmr.msra.gmra.mxu3 %vm337_vm6, %v477_v54 }
 0x1dc   : > { %727 = vrcp.f32 %v539_v60  ;;  %vm545_vm12 = vweird.f32 %v539_v60  ;;  %v551_v8 = vand.u32 2147483648, %v539_v60  ;;  %v549_v9 = vand.u32 2147483647, %v539_v60 }
 0x1de   : > { %v552_v10 = vor.u32 1.1754944e-38, %v551_v8  ;;  %vm550_vm15 = vcmp.eq.f32.partialorder %v549_v9, 8.507059e+37 }
 0x1e2   : > { %v728_v3 = vpop.eup %727 }
 0x1e3   : > { %v541_v5 = vmul.f32 %v728_v3, %v539_v60  ;;  %vm546_vm13 = vweird.f32 %v728_v3 }
 0x1e4   : > { %vm547_vm14 = vmor %vm545_vm12, %vm546_vm13 }
 0x1e5   : > { %v542_v6 = vsub.f32 1.0, %v541_v5 }
 0x1e7   : > { %v543_v7 = vmul.f32 %v728_v3, %v542_v6 }
 0x1e9   : > { %v544_v4 = vadd.f32 %v728_v3, %v543_v7 }
 0x1eb   : > { %v548_v11 = vsel %vm547_vm14, %v728_v3, %v544_v4 }
 0x1ec   : > { %v553_v14 = vsel %vm550_vm15, %v552_v10, %v548_v11 }
 0x1ed   : > { %v555_v16 = vmul.f32 %v553_v14, %v535_v57 }
 0x240   : > { %v522_v1 = vpop.f32.mrf.mxu0 }
 0x241   : > { %v563_v63 = vadd.f32 %v562_v62, %v522_v1 }
 0x243   : > { %v591_v0 = vmul.f32 %v589_v39, %v563_v63 }
 0x245   : > { %v592_v2 = vpack.c.bf16 %v591_v0, %v591_v0 }
 0x247   : > { %594 = vrot.lane.b32.xlu2 %v592_v2, %s758_s8 }
 0x25e   : > { %v499_v17 = vpop.f32.mrf.mxu3 }
 0x25f   : > { %v529_v18 = vadd.f32 %v528_v15, %v499_v17 }
 0x261   : > { %v556_v19 = vmul.f32 %v555_v16, %v529_v18 }
 0x263   : > { %v557_v20 = vpack.c.bf16 %v556_v19, %v556_v19 }
 0x265   : > { %559 = vst.msk [vmem:[%s236_s16] sm:$0xf] %vm558_vm0, %v557_v20 }
 0x2a1   : > { %v595_v21 = vpop.permute.xlu2 %594 }
 0x2a2   : > { %598 = vst.msk [vmem:[%s236_s16] sm:$0xf] %vm597_vm1, %v595_v21 }
 0x2a3 PF: > { %s16_s18 = sadd.s32 1, %s754_s18  }
 0x2a4   : > { %p13_p7 = scmp.ge.s32.totalorder %s16_s18, 4  }
 0x2a6   :  { %15 = sbr.rel (!%p13_p7) target bundleno = 1 (0x1), region = 75 }
 0x2ab   :  { %618 = vsyncpa [#allocation3], 1 }
 0x2ac   :  { %620 = vsyncpa [#allocation3 + $0x1], 1 }

// kernel: _lambda_.18
= control target key start
LH: loop header
LB: loop body
LE: loop exit
PB: predicated region body
PF: predicated region fallthrough
CT: control target
= control target key end

     0   :  { %v901_v5 = vmov 128.0   ;;  %s1239_s0 = inlined_call_operand.vmem [shape: bf16[16,128], index: 0, kind: input, shape index: {}, may-alias: {0,5}]   ;;  %s1240_s2 = inlined_call_operand.vmem [shape: bf16[128,256], index: 2, kind: input, shape index: {}]   ;;  %s1241_s3 = inlined_call_operand.vmem [shape: bf16[128,256], index: 3, kind: input, shape index: {}]   ;;  %s1242_s1 = inlined_call_operand.vmem [shape: bf16[1,128], index: 1, kind: input, shape index: {}]   ;;  %s1243_s4 = inlined_call_operand.vmem [shape: bf16[256,128], index: 4, kind: input, shape index: {}]   ;;  %s1244_s5 = inlined_call_operand.vmem [shape: bf16[16,128], index: 5, kind: input, shape index: {}, may-alias: {0,5}]   ;;  %s1245_s6 = inlined_call_operand.vmem [shape: bf16[16,128], index: 6, kind: output, shape index: {}]  }
   0x1   :  { %v861_v0 = vld [vmem:[%s1239_s0] sm:$0xff]   ;;  %879 = vrcp.f32 %v901_v5  ;;  %v673_v8 = vld [vmem:[%s1240_s2 + $0x70] sm:$0xf]  ;;  %v827_v9 = vld [vmem:[%s1240_s2 + $0x74] sm:$0xf0] }
   0x2   :  { %v940_v1 = vunpack.c.l.bf16 %v861_v0  ;;  %v944_v3 = vunpack.c.h.bf16 %v861_v0  ;;  %v826_v10 = vld [vmem:[%s1240_s2 + $0x74] sm:$0xf]  ;;  %v674_v11 = vor.u32 %v827_v9, %v673_v8  ;;  %v675_v12 = vld [vmem:[%s1240_s2 + $0x78] sm:$0xf0]  ;;  %v737_v13 = vld [vmem:[%s1241_s3 + $0x70] sm:$0xf] }
   0x3   :  { %v843_v14 = vld [vmem:[%s1241_s3 + $0x74] sm:$0xf0]  ;;  %v678_v16 = vor.u32 %v826_v10, %v675_v12  ;;  %v842_v18 = vld [vmem:[%s1241_s3 + $0x74] sm:$0xf]  ;;  %v739_v19 = vld [vmem:[%s1241_s3 + $0x78] sm:$0xf0] }
   0x4   :  { %v31_v2 = vmul.f32 %v940_v1, %v940_v1  ;;  %v32_v4 = vmul.f32 %v944_v3, %v944_v3  ;;  %v738_v17 = vor.u32 %v843_v14, %v737_v13  ;;  %192 = vmatpush.bf16.msra.mxu0 %v674_v11  ;;  %v742_v20 = vor.u32 %v842_v18, %v739_v19  ;;  %v665_v21 = vld [vmem:[%s1240_s2 + $0x60] sm:$0xf]  ;;  %v825_v22 = vld [vmem:[%s1240_s2 + $0x64] sm:$0xf0]  ;;  %v824_v23 = vld [vmem:[%s1240_s2 + $0x64] sm:$0xf] }
   0x5   :  { %206 = vmatpush.bf16.msra.mxu1 %v678_v16  ;;  %v666_v24 = vor.u32 %v825_v22, %v665_v21  ;;  %v667_v25 = vld [vmem:[%s1240_s2 + $0x68] sm:$0xf0]  ;;  %v729_v26 = vld [vmem:[%s1241_s3 + $0x60] sm:$0xf]  ;;  %v841_v27 = vld [vmem:[%s1241_s3 + $0x64] sm:$0xf0] }
   0x6   :  { %33 = vadd.xlane.f32.xlu0 %v31_v2  ;;  %316 = vmatpush.bf16.msra.mxu2 %v738_v17  ;;  %v670_v29 = vor.u32 %v824_v23, %v667_v25  ;;  %v730_v30 = vor.u32 %v841_v27, %v729_v26  ;;  %v840_v31 = vld [vmem:[%s1241_s3 + $0x64] sm:$0xf]  ;;  %v731_v32 = vld [vmem:[%s1241_s3 + $0x68] sm:$0xf0]  ;;  %v657_v34 = vld [vmem:[%s1240_s2 + $0x50] sm:$0xf] }
   0x7   :  { %v948_v6 = vpop.eup %879  ;;  %330 = vmatpush.bf16.msra.mxu3 %v742_v20  ;;  %v734_v33 = vor.u32 %v840_v31, %v731_v32  ;;  %v823_v35 = vld [vmem:[%s1240_s2 + $0x54] sm:$0xf0]  ;;  %v822_v36 = vld [vmem:[%s1240_s2 + $0x54] sm:$0xf]  ;;  %v659_v38 = vld [vmem:[%s1240_s2 + $0x58] sm:$0xf0] }
   0x8   :  { %v38_v7 = vmul.f32 128.0, %v948_v6  ;;  %193 = vmatpush.bf16.msra.mxu0 %v666_v24  ;;  %v658_v37 = vor.u32 %v823_v35, %v657_v34  ;;  %v721_v39 = vld [vmem:[%s1241_s3 + $0x50] sm:$0xf]  ;;  %v839_v40 = vld [vmem:[%s1241_s3 + $0x54] sm:$0xf0]  ;;  %v662_v42 = vor.u32 %v822_v36, %v659_v38  ;;  %vm42_vm0 = vweird.f32 %v948_v6 }
   0x9   :  { %207 = vmatpush.bf16.msra.mxu1 %v670_v29  ;;  %v722_v43 = vor.u32 %v839_v40, %v721_v39  ;;  %v838_v44 = vld [vmem:[%s1241_s3 + $0x54] sm:$0xf]  ;;  %v723_v45 = vld [vmem:[%s1241_s3 + $0x58] sm:$0xf0]  ;;  %v649_v47 = vld [vmem:[%s1240_s2 + $0x40] sm:$0xf] }
   0xa   :  { %v39_v15 = vsub.f32 1.0, %v38_v7  ;;  %317 = vmatpush.bf16.msra.mxu2 %v730_v30  ;;  %v726_v46 = vor.u32 %v838_v44, %v723_v45  ;;  %v821_v48 = vld [vmem:[%s1240_s2 + $0x44] sm:$0xf0]  ;;  %v820_v49 = vld [vmem:[%s1240_s2 + $0x44] sm:$0xf] }
   0xb   :  { %331 = vmatpush.bf16.msra.mxu3 %v734_v33  ;;  %v650_v50 = vor.u32 %v821_v48, %v649_v47  ;;  %v651_v51 = vld [vmem:[%s1240_s2 + $0x48] sm:$0xf0]  ;;  %v713_v52 = vld [vmem:[%s1241_s3 + $0x40] sm:$0xf]  ;;  %v837_v53 = vld [vmem:[%s1241_s3 + $0x44] sm:$0xf0] }
   0xc   :  { %v40_v28 = vmul.f32 %v948_v6, %v39_v15  ;;  %194 = vmatpush.bf16.msra.mxu0 %v658_v37  ;;  %v654_v55 = vor.u32 %v820_v49, %v651_v51  ;;  %v714_v56 = vor.u32 %v837_v53, %v713_v52  ;;  %v836_v57 = vld [vmem:[%s1241_s3 + $0x44] sm:$0xf]  ;;  %v715_v58 = vld [vmem:[%s1241_s3 + $0x48] sm:$0xf0]  ;;  %v641_v61 = vld [vmem:[%s1240_s2 + $0x30] sm:$0xf] }
   0xd   :  { %208 = vmatpush.bf16.msra.mxu1 %v662_v42  ;;  %v718_v59 = vor.u32 %v836_v57, %v715_v58  ;;  %v819_v62 = vld [vmem:[%s1240_s2 + $0x34] sm:$0xf0]  ;;  %v818_v63 = vld [vmem:[%s1240_s2 + $0x34] sm:$0xf]  ;;  %v705_v5 = vld [vmem:[%s1241_s3 + $0x30] sm:$0xf] }
   0xe   :  { %35 = vadd.xlane.f32.xlu0 %v32_v4  ;;  %v41_v41 = vadd.f32 %v948_v6, %v40_v28  ;;  %318 = vmatpush.bf16.msra.mxu2 %v722_v43  ;;  %v642_v2 = vor.u32 %v819_v62, %v641_v61  ;;  %v643_v4 = vld [vmem:[%s1240_s2 + $0x38] sm:$0xf0]  ;;  %v834_v9 = vld [vmem:[%s1241_s3 + $0x34] sm:$0xf]  ;;  %v633_v13 = vld [vmem:[%s1240_s2 + $0x20] sm:$0xf] }
   0xf   :  { %332 = vmatpush.bf16.msra.mxu3 %v726_v46  ;;  %v646_v7 = vor.u32 %v818_v63, %v643_v4  ;;  %v707_v10 = vld [vmem:[%s1241_s3 + $0x38] sm:$0xf0]  ;;  %v817_v14 = vld [vmem:[%s1240_s2 + $0x24] sm:$0xf0]  ;;  %v816_v15 = vld [vmem:[%s1240_s2 + $0x24] sm:$0xf] }
  0x10   :  { %v43_v54 = vsel %vm42_vm0, %v948_v6, %v41_v41  ;;  %195 = vmatpush.bf16.msra.mxu0 %v650_v50  ;;  %v835_v6 = vld [vmem:[%s1241_s3 + $0x34] sm:$0xf0]  ;;  %v710_v12 = vor.u32 %v834_v9, %v707_v10  ;;  %v634_v16 = vor.u32 %v817_v14, %v633_v13  ;;  %v635_v17 = vld [vmem:[%s1240_s2 + $0x28] sm:$0xf0]  ;;  %v697_v18 = vld [vmem:[%s1241_s3 + $0x20] sm:$0xf] }
  0x11   :  { %209 = vmatpush.bf16.msra.mxu1 %v654_v55  ;;  %v706_v8 = vor.u32 %v835_v6, %v705_v5  ;;  %v833_v19 = vld [vmem:[%s1241_s3 + $0x24] sm:$0xf0]  ;;  %v638_v20 = vor.u32 %v816_v15, %v635_v17  ;;  %v832_v22 = vld [vmem:[%s1241_s3 + $0x24] sm:$0xf]  ;;  %v699_v23 = vld [vmem:[%s1241_s3 + $0x28] sm:$0xf0] }
  0x12   :  { %319 = vmatpush.bf16.msra.mxu2 %v714_v56  ;;  %v698_v21 = vor.u32 %v833_v19, %v697_v18  ;;  %v702_v24 = vor.u32 %v832_v22, %v699_v23  ;;  %v625_v26 = vld [vmem:[%s1240_s2 + $0x10] sm:$0xf]  ;;  %v815_v27 = vld [vmem:[%s1240_s2 + $0x14] sm:$0xf0]  ;;  %v814_v28 = vld [vmem:[%s1240_s2 + $0x14] sm:$0xf] }
  0x13   :  { %333 = vmatpush.bf16.msra.mxu3 %v718_v59  ;;  %v626_v30 = vor.u32 %v815_v27, %v625_v26  ;;  %v627_v31 = vld [vmem:[%s1240_s2 + $0x18] sm:$0xf0]  ;;  %v689_v32 = vld [vmem:[%s1241_s3 + $0x10] sm:$0xf]  ;;  %v831_v33 = vld [vmem:[%s1241_s3 + $0x14] sm:$0xf0] }
  0x14   :  { %196 = vmatpush.bf16.msra.mxu0 %v642_v2  ;;  %v630_v34 = vor.u32 %v814_v28, %v627_v31  ;;  %v690_v35 = vor.u32 %v831_v33, %v689_v32  ;;  %v830_v36 = vld [vmem:[%s1241_s3 + $0x14] sm:$0xf]  ;;  %v691_v37 = vld [vmem:[%s1241_s3 + $0x18] sm:$0xf0]  ;;  %v617_v38 = vld [vmem:[%s1240_s2] sm:$0xf] }
  0x15   :  { %210 = vmatpush.bf16.msra.mxu1 %v646_v7  ;;  %v694_v41 = vor.u32 %v830_v36, %v691_v37  ;;  %v813_v42 = vld [vmem:[%s1240_s2 + $0x4] sm:$0xf0]  ;;  %v812_v43 = vld [vmem:[%s1240_s2 + $0x4] sm:$0xf]  ;;  %v619_v46 = vld [vmem:[%s1240_s2 + $0x8] sm:$0xf0] }
  0x16   :  { %320 = vmatpush.bf16.msra.mxu2 %v706_v8  ;;  %v618_v45 = vor.u32 %v813_v42, %v617_v38  ;;  %v681_v47 = vld [vmem:[%s1241_s3] sm:$0xf]  ;;  %v829_v48 = vld [vmem:[%s1241_s3 + $0x4] sm:$0xf0]  ;;  %v622_v49 = vor.u32 %v812_v43, %v619_v46  ;;  %v828_v51 = vld [vmem:[%s1241_s3 + $0x4] sm:$0xf] }
  0x17   :  { %334 = vmatpush.bf16.msra.mxu3 %v710_v12  ;;  %v682_v50 = vor.u32 %v829_v48, %v681_v47  ;;  %v683_v52 = vld [vmem:[%s1241_s3 + $0x8] sm:$0xf0]  ;;  %v850_v18 = vld [vmem:[%s1243_s4 + $0x30] sm:$0xff]  ;;  %v848_v22 = vld [vmem:[%s1243_s4 + $0x20] sm:$0xff] }
  0x18   :  { %197 = vmatpush.bf16.msra.mxu0 %v634_v16  ;;  %v858_v19 = vld [vmem:[%s1243_s4 + $0x70] sm:$0xff]  ;;  %v856_v23 = vld [vmem:[%s1243_s4 + $0x60] sm:$0xff]  ;;  %v845_v32 = vld [vmem:[%s1243_s4 + $0x8] sm:$0xff] }
  0x19   :  { %211 = vmatpush.bf16.msra.mxu1 %v638_v20  ;;  %v849_v20 = vld [vmem:[%s1243_s4 + $0x28] sm:$0xff]  ;;  %v854_v31 = vld [vmem:[%s1243_s4 + $0x50] sm:$0xff]  ;;  %v852_v42 = vld [vmem:[%s1243_s4 + $0x40] sm:$0xff] }
  0x1a   :  { %321 = vmatpush.bf16.msra.mxu2 %v698_v21  ;;  %v857_v21 = vld [vmem:[%s1243_s4 + $0x68] sm:$0xff] }
  0x1b   :  { %335 = vmatpush.bf16.msra.mxu3 %v702_v24  ;;  %v847_v24 = vld [vmem:[%s1243_s4 + $0x18] sm:$0xff]  ;;  %v853_v33 = vld [vmem:[%s1243_s4 + $0x48] sm:$0xff] }
  0x1c   :  { %198 = vmatpush.bf16.msra.mxu0 %v626_v30  ;;  %v846_v30 = vld [vmem:[%s1243_s4 + $0x10] sm:$0xff] }
  0x1d   :  { %212 = vmatpush.bf16.msra.mxu1 %v630_v34 }
  0x1e   :  { %322 = vmatpush.bf16.msra.mxu2 %v690_v35 }
  0x1f   :  { %336 = vmatpush.bf16.msra.mxu3 %v694_v41  ;;  %v844_v41 = vld [vmem:[%s1243_s4] sm:$0xff] }
  0x20   :  { %199 = vmatpush.bf16.msra.mxu0 %v618_v45 }
  0x21   :  { %213 = vmatpush.bf16.msra.mxu1 %v622_v49 }
  0x22   :  { %323 = vmatpush.bf16.msra.mxu2 %v682_v50 }
  0x79   :  { %v34_v60 = vpop.xlane.xlu0 %33 }
  0x7a   :  { %v44_v0 = vmul.f32 %v43_v54, %v34_v60  ;;  %v72_v60 = vld [vmem:[%s1242_s1] sm:$0x1] }
  0x7c   :  { %v1075_v11 = vadd.f32 1e-05, %v44_v0  ;;  %v74_v0 = vpack.i.b16 %v72_v60, %v72_v60 }
  0x7e   :  { %881 = vrsqrt.f32 %v1075_v11  ;;  %vm54_vm2 = vweird.f32 %v1075_v11  ;;  %v76_v6 = vperm.slane %v74_v0, 0 }
  0x80   :  { %v79_v10 = vunpack.c.l.bf16 %v76_v6 }
  0x81   :  { %v36_v25 = vpop.xlane.xlu0 %35 }
  0x82   :  { %v45_v29 = vmul.f32 %v43_v54, %v36_v25  ;;  %v686_v54 = vor.u32 %v828_v51, %v683_v52  ;;  %v855_v25 = vld [vmem:[%s1243_s4 + $0x58] sm:$0xff] }
  0x84   :  { %v882_v39 = vpop.eup %881  ;;  %v47_v40 = vadd.f32 1e-05, %v45_v29  ;;  %337 = vmatpush.bf16.msra.mxu3 %v686_v54 }
  0x85   :  { %v49_v44 = vmul.f32 %v882_v39, %v1075_v11  ;;  %vm55_vm1 = vweird.f32 %v882_v39 }
  0x86   :  { %883 = vrsqrt.f32 %v47_v40  ;;  %vm56_vm3 = vmor %vm54_vm2, %vm55_vm1  ;;  %vm64_vm5 = vweird.f32 %v47_v40 }
  0x87   :  { %v50_v53 = vmul.f32 %v882_v39, %v49_v44 }
  0x89   :  { %v51_v55 = vmul.f32 0.5, %v50_v53 }
  0x8b   :  { %v52_v56 = vsub.f32 1.5, %v51_v55 }
  0x8c   :  { %v884_v57 = vpop.eup %883 }
  0x8d   :  { %v53_v58 = vmul.f32 %v882_v39, %v52_v56  ;;  %v59_v59 = vmul.f32 %v884_v57, %v47_v40  ;;  %vm65_vm4 = vweird.f32 %v884_v57 }
  0x8e   :  { %vm66_vm6 = vmor %vm64_vm5, %vm65_vm4 }
  0x8f   :  { %v57_v61 = vsel %vm56_vm3, %v882_v39, %v53_v58  ;;  %v60_v62 = vmul.f32 %v884_v57, %v59_v59 }
  0x90   :  { %v68_v2 = vmul.f32 %v940_v1, %v57_v61  ;;  %v851_v1 = vld [vmem:[%s1243_s4 + $0x38] sm:$0xff] }
  0x91   :  { %v61_v63 = vmul.f32 0.5, %v60_v62  ;;  %560 = vmatpush.bf16.msrb.mxu0 %v851_v1 }
  0x92   :  { %v70_v7 = vpack.c.bf16 %v68_v2, %v68_v2 }
  0x93   :  { %v62_v4 = vsub.f32 1.5, %v61_v63 }
  0x94   :  { %v77_v11 = vunpack.c.l.bf16 %v70_v7 }
  0x95   :  { %v63_v5 = vmul.f32 %v884_v57, %v62_v4  ;;  %561 = vmatpush.bf16.msrb.mxu0 %v850_v18 }
  0x96   :  { %v80_v14 = vmul.f32 %v79_v10, %v77_v11 }
  0x97   :  { %v67_v8 = vsel %vm66_vm6, %v884_v57, %v63_v5 }
  0x98   :  { %v69_v9 = vmul.f32 %v944_v3, %v67_v8  ;;  %v859_v3 = vld [vmem:[%s1243_s4 + $0x78] sm:$0xff] }
  0x99   :  { %574 = vmatpush.bf16.msrb.mxu1 %v859_v3  ;;  %562 = vmatpush.bf16.msrb.mxu0 %v849_v20 }
  0x9a   :  { %v71_v12 = vpack.c.bf16 %v69_v9, %v69_v9 }
  0x9c   :  { %v78_v13 = vunpack.c.l.bf16 %v71_v12 }
  0x9d   :  { %575 = vmatpush.bf16.msrb.mxu1 %v858_v19  ;;  %563 = vmatpush.bf16.msrb.mxu0 %v848_v22 }
  0x9e   :  { %v81_v15 = vmul.f32 %v79_v10, %v78_v13 }
  0xa0   :  { %v867_v16 = vpack.c.bf16 %v81_v15, %v80_v14 }
  0xa1   :  { %576 = vmatpush.bf16.msrb.mxu1 %v857_v21  ;;  %564 = vmatpush.bf16.msrb.mxu0 %v847_v24 }
  0xa2   :  { %868 = vst [vmem:[#allocation3] sm:$0xff] %v867_v16  }
  0xa5   :  { %577 = vmatpush.bf16.msrb.mxu1 %v856_v23  ;;  %565 = vmatpush.bf16.msrb.mxu0 %v846_v30 }
  0xa9   :  { %v811_v17 = vld [vmem:[#allocation3] sm:$0xff]  ;;  %578 = vmatpush.bf16.msrb.mxu1 %v855_v25  ;;  %566 = vmatpush.bf16.msrb.mxu0 %v845_v32 }
  0xaa   :  { %200 = vmatmul.bf16.vlgmr.msra.gmra.mxu0 %v811_v17  ;;  %214 = vmatmul.bf16.vlgmr.msra.gmra.mxu1 %v811_v17 }
  0xab   :  { %324 = vmatmul.bf16.vlgmr.msra.gmra.mxu2 %v811_v17  ;;  %338 = vmatmul.bf16.vlgmr.msra.gmra.mxu3 %v811_v17 }
  0xad   :  { %579 = vmatpush.bf16.msrb.mxu1 %v854_v31  ;;  %567 = vmatpush.bf16.msrb.mxu0 %v844_v41 }
  0xb1   :  { %580 = vmatpush.bf16.msrb.mxu1 %v853_v33 }
  0xb5   :  { %581 = vmatpush.bf16.msrb.mxu1 %v852_v42 }
 0x127   :  { %v1187_v26 = vpop.f32.mrf.mxu0  ;;  %v1189_v27 = vpop.f32.mrf.mxu1 }
 0x128   :  { %v743_v28 = vmul.f32 -1.442695, %v1187_v26  ;;  %v744_v29 = vmul.f32 -1.442695, %v1189_v27 }
 0x12a   :  { %885 = vpow2.f32 %v743_v28 }
 0x12b   :  { %887 = vpow2.f32 %v744_v29 }
 0x12e   :  { %v325_v0 = vpop.f32.mrf.mxu2  ;;  %v339_v11 = vpop.f32.mrf.mxu3 }
 0x12f   :  { %v1205_v34 = vpop.f32.mrf.mxu0  ;;  %v1207_v35 = vpop.f32.mrf.mxu1 }
 0x130   :  { %v886_v36 = vpop.eup %885  ;;  %v745_v37 = vmul.f32 -1.442695, %v1205_v34  ;;  %v746_v40 = vmul.f32 -1.442695, %v1207_v35 }
 0x131   :  { %v888_v38 = vpop.eup %887  ;;  %v356_v39 = vadd.f32 1.0, %v886_v36 }
 0x132   :  { %v357_v43 = vadd.f32 1.0, %v888_v38  ;;  %889 = vpow2.f32 %v745_v37 }
 0x133   :  { %891 = vrcp.f32 %v356_v39  ;;  %v371_v58 = vand.u32 2147483648, %v356_v39  ;;  %vm365_vm8 = vweird.f32 %v356_v39  ;;  %v369_v59 = vand.u32 2147483647, %v356_v39 }
 0x134   :  { %893 = vrcp.f32 %v357_v43  ;;  %v384_v63 = vand.u32 2147483647, %v357_v43  ;;  %v386_v5 = vand.u32 2147483648, %v357_v43  ;;  %vm380_vm11 = vweird.f32 %v357_v43 }
 0x135   :  { %895 = vpow2.f32 %v746_v40  ;;  %v372_v7 = vor.u32 1.1754944e-38, %v371_v58  ;;  %vm370_vm12 = vcmp.eq.f32.partialorder %v369_v59, 8.507059e+37 }
 0x136   :  { %vm385_vm15 = vcmp.eq.f32.partialorder %v384_v63, 8.507059e+37  ;;  %v387_v17 = vor.u32 1.1754944e-38, %v386_v5  ;;  %v327_v32 = vpop.f32.mrf.mxu2 }
 0x138   :  { %v890_v44 = vpop.eup %889 }
 0x139   :  { %v892_v45 = vpop.eup %891  ;;  %v358_v46 = vadd.f32 1.0, %v890_v44 }
 0x13a   :  { %v894_v47 = vpop.eup %893  ;;  %v361_v48 = vmul.f32 %v892_v45, %v356_v39  ;;  %vm366_vm7 = vweird.f32 %v892_v45  ;;  %v341_v39 = vpop.f32.mrf.mxu3 }
 0x13b   :  { %v896_v49 = vpop.eup %895  ;;  %v376_v50 = vmul.f32 %v894_v47, %v357_v43  ;;  %897 = vrcp.f32 %v358_v46  ;;  %vm1217_vm9 = vmor %vm365_vm8, %vm366_vm7  ;;  %vm381_vm10 = vweird.f32 %v894_v47  ;;  %v401_v8 = vand.u32 2147483648, %v358_v46 }
 0x13c   :  { %v362_v51 = vsub.f32 1.0, %v361_v48  ;;  %v359_v52 = vadd.f32 1.0, %v896_v49  ;;  %vm1223_vm13 = vmor %vm380_vm11, %vm381_vm10  ;;  %v399_v13 = vand.u32 2147483647, %v358_v46  ;;  %vm395_vm0 = vweird.f32 %v358_v46 }
 0x13d   :  { %v377_v53 = vsub.f32 1.0, %v376_v50  ;;  %v402_v18 = vor.u32 1.1754944e-38, %v401_v8 }
 0x13e   :  { %v363_v54 = vmul.f32 %v892_v45, %v362_v51  ;;  %899 = vrcp.f32 %v359_v52  ;;  %v416_v3 = vand.u32 2147483648, %v359_v52  ;;  %v414_v20 = vand.u32 2147483647, %v359_v52 }
 0x13f   :  { %v378_v55 = vmul.f32 %v894_v47, %v377_v53  ;;  %vm400_vm3 = vcmp.eq.f32.partialorder %v399_v13, 8.507059e+37  ;;  %vm410_vm4 = vweird.f32 %v359_v52 }
 0x140   :  { %v364_v56 = vadd.f32 %v892_v45, %v363_v54  ;;  %v417_v29 = vor.u32 1.1754944e-38, %v416_v3  ;;  %vm415_vm6 = vcmp.eq.f32.partialorder %v414_v20, 8.507059e+37 }
 0x141   :  { %v898_v57 = vpop.eup %897  ;;  %v379_v62 = vadd.f32 %v894_v47, %v378_v55 }
 0x142   :  { %v391_v60 = vmul.f32 %v898_v57, %v358_v46  ;;  %v368_v4 = vsel %vm1217_vm9, %v892_v45, %v364_v56  ;;  %vm396_vm14 = vweird.f32 %v898_v57 }
 0x143   :  { %v373_v14 = vsel %vm370_vm12, %v372_v7, %v368_v4  ;;  %v383_v15 = vsel %vm1223_vm13, %v894_v47, %v379_v62  ;;  %vm397_vm1 = vmor %vm395_vm0, %vm396_vm14 }
 0x144   :  { %v900_v2 = vpop.eup %899  ;;  %v392_v6 = vsub.f32 1.0, %v391_v60  ;;  %v420_v21 = vmul.f32 %v373_v14, %v1187_v26  ;;  %v388_v22 = vsel %vm385_vm15, %v387_v17, %v383_v15 }
 0x145   :  { %v406_v9 = vmul.f32 %v900_v2, %v359_v52  ;;  %vm411_vm2 = vweird.f32 %v900_v2  ;;  %v421_v30 = vmul.f32 %v388_v22, %v1189_v27  ;;  %v870_v27 = vld [vmem:[%s1244_s5] sm:$0xff]  }
 0x146   :  { %v393_v12 = vmul.f32 %v898_v57, %v392_v6  ;;  %vm412_vm5 = vmor %vm410_vm4, %vm411_vm2  ;;  %v424_v33 = vmul.f32 %v420_v21, %v325_v0  ;;  %v871_v46 = vunpack.c.l.bf16 %v870_v27  ;;  %v872_v47 = vunpack.c.h.bf16 %v870_v27 }
 0x147   :  { %v407_v16 = vsub.f32 1.0, %v406_v9  ;;  %v425_v40 = vmul.f32 %v421_v30, %v339_v11 }
 0x148   :  { %v394_v1 = vadd.f32 %v898_v57, %v393_v12 }
 0x149   :  { %v408_v19 = vmul.f32 %v900_v2, %v407_v16 }
 0x14a   :  { %v398_v23 = vsel %vm397_vm1, %v898_v57, %v394_v1 }
 0x14b   :  { %v403_v24 = vsel %vm400_vm3, %v402_v18, %v398_v23  ;;  %v409_v25 = vadd.f32 %v900_v2, %v408_v19 }
 0x14c   :  { %v422_v28 = vmul.f32 %v403_v24, %v1205_v34 }
 0x14d   :  { %v413_v31 = vsel %vm412_vm5, %v900_v2, %v409_v25 }
 0x14e   :  { %v418_v36 = vsel %vm415_vm6, %v417_v29, %v413_v31  ;;  %v426_v37 = vmul.f32 %v422_v28, %v327_v32 }
 0x14f   :  { %v423_v26 = vmul.f32 %v418_v36, %v1207_v35 }
 0x150   :  { %v428_v38 = vpack.c.bf16 %v426_v37, %v424_v33 }
 0x151   :  { %v427_v41 = vmul.f32 %v423_v26, %v341_v39 }
 0x152   :  { %568 = vmatmul.bf16.vlgmr.msrb.gmra.mxu0 %v428_v38 }
 0x153   :  { %v429_v42 = vpack.c.bf16 %v427_v41, %v425_v40 }
 0x155   :  { %582 = vmatmul.bf16.vlgmr.msrb.gmra.mxu1 %v429_v42 }
 0x1cf   :  { %v569_v34 = vpop.f32.mrf.mxu0 }
 0x1d2   :  { %v583_v43 = vpop.f32.mrf.mxu1 }
 0x1d3   :  { %v584_v45 = vadd.f32 %v583_v43, %v569_v34 }
 0x1d5   :  { %v601_v35 = vadd.f32 %v871_v46, %v584_v45 }
 0x1d7   :  { %v571_v44 = vpop.f32.mrf.mxu0 }
 0x1da   :  { %v585_v48 = vpop.f32.mrf.mxu1 }
 0x1db   :  { %v586_v49 = vadd.f32 %v585_v48, %v571_v44 }
 0x1dd   :  { %v602_v50 = vadd.f32 %v872_v47, %v586_v49 }
 0x1df   :  { %v876_v51 = vpack.c.bf16 %v602_v50, %v601_v35 }
 0x1e1   :  { %877 = vst [vmem:[%s1245_s6] sm:$0xff] %v876_v51  }

// kernel: _lambda_.23
= control target key start
LH: loop header
LB: loop body
LE: loop exit
PB: predicated region body
PF: predicated region fallthrough
CT: control target
= control target key end

     0   :  { %v90_v5 = vmov 128.0   ;;  %s115_s0 = inlined_call_operand.vmem [shape: bf16[16,128], index: 0, kind: input, shape index: {}]   ;;  %s116_s1 = inlined_call_operand.vmem [shape: bf16[1,128], index: 1, kind: input, shape index: {}]   ;;  %s117_s2 = inlined_call_operand.vmem [shape: bf16[16,128], index: 2, kind: output, shape index: {}]  }
   0x1   :  { %v75_v0 = vld [vmem:[%s115_s0] sm:$0xff]   ;;  %84 = vrcp.f32 %v90_v5 }
   0x2   :  { %v76_v1 = vunpack.c.l.bf16 %v75_v0  ;;  %v77_v3 = vunpack.c.h.bf16 %v75_v0  ;;  %v56_v26 = vld [vmem:[%s116_s1] sm:$0x1] }
   0x3   :  { %v58_v30 = vpack.i.b16 %v56_v26, %v56_v26 }
   0x4   :  { %v15_v2 = vmul.f32 %v76_v1, %v76_v1  ;;  %v16_v4 = vmul.f32 %v77_v3, %v77_v3 }
   0x5   :  { %v60_v34 = vperm.slane %v58_v30, 0 }
   0x6   :  { %17 = vadd.xlane.f32.xlu0 %v15_v2 }
   0x7   :  { %v85_v6 = vpop.eup %84  ;;  %v61_v38 = vunpack.c.l.bf16 %v60_v34 }
   0x8   :  { %v22_v7 = vmul.f32 128.0, %v85_v6  ;;  %vm26_vm0 = vweird.f32 %v85_v6 }
   0xa   :  { %v23_v8 = vsub.f32 1.0, %v22_v7 }
   0xc   :  { %v24_v9 = vmul.f32 %v85_v6, %v23_v8 }
   0xe   :  { %19 = vadd.xlane.f32.xlu0 %v16_v4  ;;  %v25_v10 = vadd.f32 %v85_v6, %v24_v9 }
  0x10   :  { %v27_v11 = vsel %vm26_vm0, %v85_v6, %v25_v10 }
  0x79   :  { %v18_v12 = vpop.xlane.xlu0 %17 }
  0x7a   :  { %v28_v13 = vmul.f32 %v27_v11, %v18_v12 }
  0x7c   :  { %v30_v14 = vadd.f32 1e-05, %v28_v13 }
  0x7e   :  { %86 = vrsqrt.f32 %v30_v14  ;;  %vm38_vm2 = vweird.f32 %v30_v14 }
  0x81   :  { %v20_v15 = vpop.xlane.xlu0 %19 }
  0x82   :  { %v29_v16 = vmul.f32 %v27_v11, %v20_v15 }
  0x84   :  { %v87_v17 = vpop.eup %86  ;;  %v31_v18 = vadd.f32 1e-05, %v29_v16 }
  0x85   :  { %v33_v19 = vmul.f32 %v87_v17, %v30_v14  ;;  %vm39_vm1 = vweird.f32 %v87_v17 }
  0x86   :  { %88 = vrsqrt.f32 %v31_v18  ;;  %vm40_vm3 = vmor %vm38_vm2, %vm39_vm1  ;;  %vm48_vm5 = vweird.f32 %v31_v18 }
  0x87   :  { %v34_v20 = vmul.f32 %v87_v17, %v33_v19 }
  0x89   :  { %v35_v21 = vmul.f32 0.5, %v34_v20 }
  0x8b   :  { %v36_v22 = vsub.f32 1.5, %v35_v21 }
  0x8c   :  { %v89_v23 = vpop.eup %88 }
  0x8d   :  { %v37_v24 = vmul.f32 %v87_v17, %v36_v22  ;;  %v43_v25 = vmul.f32 %v89_v23, %v31_v18  ;;  %vm49_vm4 = vweird.f32 %v89_v23 }
  0x8e   :  { %vm50_vm6 = vmor %vm48_vm5, %vm49_vm4 }
  0x8f   :  { %v41_v27 = vsel %vm40_vm3, %v87_v17, %v37_v24  ;;  %v44_v28 = vmul.f32 %v89_v23, %v43_v25 }
  0x90   :  { %v52_v31 = vmul.f32 %v76_v1, %v41_v27 }
  0x91   :  { %v45_v29 = vmul.f32 0.5, %v44_v28 }
  0x92   :  { %v54_v35 = vpack.c.bf16 %v52_v31, %v52_v31 }
  0x93   :  { %v46_v32 = vsub.f32 1.5, %v45_v29 }
  0x94   :  { %v62_v39 = vunpack.c.l.bf16 %v54_v35 }
  0x95   :  { %v47_v33 = vmul.f32 %v89_v23, %v46_v32 }
  0x96   :  { %v64_v42 = vmul.f32 %v62_v39, %v61_v38 }
  0x97   :  { %v51_v36 = vsel %vm50_vm6, %v89_v23, %v47_v33 }
  0x98   :  { %v53_v37 = vmul.f32 %v77_v3, %v51_v36 }
  0x9a   :  { %v55_v40 = vpack.c.bf16 %v53_v37, %v53_v37 }
  0x9c   :  { %v63_v41 = vunpack.c.l.bf16 %v55_v40 }
  0x9e   :  { %v65_v43 = vmul.f32 %v63_v41, %v61_v38 }
  0xa0   :  { %v81_v44 = vpack.c.bf16 %v65_v43, %v64_v42 }
  0xa2   :  { %82 = vst [vmem:[%s117_s2] sm:$0xff] %v81_v44  }

// kernel: _lambda_.29
= control target key start
LH: loop header
LB: loop body
LE: loop exit
PB: predicated region body
PF: predicated region fallthrough
CT: control target
= control target key end

     0   :  { %s467_s1 = inlined_call_operand.vmem [shape: bf16[128,256], index: 1, kind: input, shape index: {}]   ;;  %s468_s0 = inlined_call_operand.vmem [shape: bf16[32,128], index: 0, kind: input, shape index: {}]   ;;  %s469_s2 = inlined_call_operand.vmem [shape: f32[32,256], index: 2, kind: output, shape index: {}]  }
   0x1   :  { %v286_v0 = vld [vmem:[%s467_s1 + $0x70] sm:$0xf]  ;;  %v309_v1 = vld [vmem:[%s467_s1 + $0x74] sm:$0xf0]  ;;  %v308_v2 = vld [vmem:[%s467_s1 + $0x74] sm:$0xf] }
   0x2   :  { %v287_v3 = vor.u32 %v309_v1, %v286_v0  ;;  %v288_v4 = vld [vmem:[%s467_s1 + $0x78] sm:$0xf0]  ;;  %v278_v5 = vld [vmem:[%s467_s1 + $0x60] sm:$0xf]  ;;  %v307_v6 = vld [vmem:[%s467_s1 + $0x64] sm:$0xf0] }
   0x3   :  { %v291_v7 = vor.u32 %v308_v2, %v288_v4  ;;  %v306_v8 = vld [vmem:[%s467_s1 + $0x64] sm:$0xf]  ;;  %v280_v9 = vld [vmem:[%s467_s1 + $0x68] sm:$0xf0]  ;;  %v279_v10 = vor.u32 %v307_v6, %v278_v5  ;;  %v270_v12 = vld [vmem:[%s467_s1 + $0x50] sm:$0xf] }
   0x4   :  { %143 = vmatpush.bf16.msra.mxu0 %v287_v3  ;;  %310 = vmatpush.bf16.msra.mxu2 %v287_v3  ;;  %v283_v11 = vor.u32 %v306_v8, %v280_v9  ;;  %v305_v13 = vld [vmem:[%s467_s1 + $0x54] sm:$0xf0]  ;;  %v304_v14 = vld [vmem:[%s467_s1 + $0x54] sm:$0xf]  ;;  %v272_v15 = vld [vmem:[%s467_s1 + $0x58] sm:$0xf0] }
   0x5   :  { %162 = vmatpush.bf16.msra.mxu1 %v291_v7  ;;  %318 = vmatpush.bf16.msra.mxu3 %v291_v7  ;;  %v271_v16 = vor.u32 %v305_v13, %v270_v12  ;;  %v275_v17 = vor.u32 %v304_v14, %v272_v15  ;;  %v262_v18 = vld [vmem:[%s467_s1 + $0x40] sm:$0xf]  ;;  %v303_v19 = vld [vmem:[%s467_s1 + $0x44] sm:$0xf0]  ;;  %v302_v20 = vld [vmem:[%s467_s1 + $0x44] sm:$0xf] }
   0x6   :  { %v264_v21 = vld [vmem:[%s467_s1 + $0x48] sm:$0xf0]  ;;  %v263_v22 = vor.u32 %v303_v19, %v262_v18  ;;  %v254_v24 = vld [vmem:[%s467_s1 + $0x30] sm:$0xf]  ;;  %v301_v25 = vld [vmem:[%s467_s1 + $0x34] sm:$0xf0] }
   0x7   :  { %v267_v23 = vor.u32 %v302_v20, %v264_v21  ;;  %v300_v26 = vld [vmem:[%s467_s1 + $0x34] sm:$0xf]  ;;  %v256_v27 = vld [vmem:[%s467_s1 + $0x38] sm:$0xf0]  ;;  %v255_v28 = vor.u32 %v301_v25, %v254_v24  ;;  %v246_v30 = vld [vmem:[%s467_s1 + $0x20] sm:$0xf] }
   0x8   :  { %144 = vmatpush.bf16.msra.mxu0 %v279_v10  ;;  %311 = vmatpush.bf16.msra.mxu2 %v279_v10  ;;  %v259_v29 = vor.u32 %v300_v26, %v256_v27  ;;  %v299_v31 = vld [vmem:[%s467_s1 + $0x24] sm:$0xf0]  ;;  %v298_v32 = vld [vmem:[%s467_s1 + $0x24] sm:$0xf]  ;;  %v248_v33 = vld [vmem:[%s467_s1 + $0x28] sm:$0xf0] }
   0x9   :  { %163 = vmatpush.bf16.msra.mxu1 %v283_v11  ;;  %319 = vmatpush.bf16.msra.mxu3 %v283_v11  ;;  %v247_v34 = vor.u32 %v299_v31, %v246_v30  ;;  %v251_v35 = vor.u32 %v298_v32, %v248_v33  ;;  %v238_v36 = vld [vmem:[%s467_s1 + $0x10] sm:$0xf]  ;;  %v297_v37 = vld [vmem:[%s467_s1 + $0x14] sm:$0xf0]  ;;  %v296_v38 = vld [vmem:[%s467_s1 + $0x14] sm:$0xf] }
   0xa   :  { %v240_v39 = vld [vmem:[%s467_s1 + $0x18] sm:$0xf0]  ;;  %v239_v40 = vor.u32 %v297_v37, %v238_v36  ;;  %v230_v42 = vld [vmem:[%s467_s1] sm:$0xf]  ;;  %v295_v43 = vld [vmem:[%s467_s1 + $0x4] sm:$0xf0] }
   0xb   :  { %v243_v41 = vor.u32 %v296_v38, %v240_v39  ;;  %v294_v44 = vld [vmem:[%s467_s1 + $0x4] sm:$0xf]  ;;  %v232_v45 = vld [vmem:[%s467_s1 + $0x8] sm:$0xf0]  ;;  %v231_v46 = vor.u32 %v295_v43, %v230_v42 }
   0xc   :  { %145 = vmatpush.bf16.msra.mxu0 %v271_v16  ;;  %312 = vmatpush.bf16.msra.mxu2 %v271_v16  ;;  %v235_v47 = vor.u32 %v294_v44, %v232_v45  ;;  %v292_v48 = vld [vmem:[%s468_s0] sm:$0xff]  ;;  %v293_v49 = vld [vmem:[%s468_s0 + $0x8] sm:$0xff] }
   0xd   :  { %164 = vmatpush.bf16.msra.mxu1 %v275_v17  ;;  %320 = vmatpush.bf16.msra.mxu3 %v275_v17 }
  0x10   :  { %146 = vmatpush.bf16.msra.mxu0 %v263_v22  ;;  %313 = vmatpush.bf16.msra.mxu2 %v263_v22 }
  0x11   :  { %165 = vmatpush.bf16.msra.mxu1 %v267_v23  ;;  %321 = vmatpush.bf16.msra.mxu3 %v267_v23 }
  0x14   :  { %147 = vmatpush.bf16.msra.mxu0 %v255_v28  ;;  %314 = vmatpush.bf16.msra.mxu2 %v255_v28 }
  0x15   :  { %166 = vmatpush.bf16.msra.mxu1 %v259_v29  ;;  %322 = vmatpush.bf16.msra.mxu3 %v259_v29 }
  0x18   :  { %148 = vmatpush.bf16.msra.mxu0 %v247_v34  ;;  %315 = vmatpush.bf16.msra.mxu2 %v247_v34 }
  0x19   :  { %167 = vmatpush.bf16.msra.mxu1 %v251_v35  ;;  %323 = vmatpush.bf16.msra.mxu3 %v251_v35 }
  0x1c   :  { %149 = vmatpush.bf16.msra.mxu0 %v239_v40  ;;  %316 = vmatpush.bf16.msra.mxu2 %v239_v40 }
  0x1d   :  { %168 = vmatpush.bf16.msra.mxu1 %v243_v41  ;;  %324 = vmatpush.bf16.msra.mxu3 %v243_v41 }
  0x20   :  { %150 = vmatpush.bf16.msra.mxu0 %v231_v46  ;;  %317 = vmatpush.bf16.msra.mxu2 %v231_v46 }
  0x21   :  { %169 = vmatpush.bf16.msra.mxu1 %v235_v47  ;;  %325 = vmatpush.bf16.msra.mxu3 %v235_v47 }
  0x23   :  { %151 = vmatmul.bf16.vlgmr.msra.gmra.mxu0 %v292_v48  ;;  %156 = vmatmul.bf16.vlgmr.msra.gmra.mxu2 %v293_v49 }
  0x24   :  { %170 = vmatmul.bf16.vlgmr.msra.gmra.mxu1 %v292_v48  ;;  %175 = vmatmul.bf16.vlgmr.msra.gmra.mxu3 %v293_v49 }
  0xa0   :  { %v152_v50 = vpop.f32.mrf.mxu0 }
  0xa1   :  { %208 = vst [vmem:[%s469_s2] sm:$0xff] %v152_v50  ;;  %v171_v51 = vpop.f32.mrf.mxu1 }
  0xa2   :  { %209 = vst [vmem:[%s469_s2 + $0x8] sm:$0xff] %v171_v51 }
  0xa6   :  { %v157_v52 = vpop.f32.mrf.mxu2 }
  0xa7   :  { %212 = vst [vmem:[%s469_s2 + $0x20] sm:$0xff] %v157_v52  ;;  %v176_v53 = vpop.f32.mrf.mxu3 }
  0xa8   :  { %213 = vst [vmem:[%s469_s2 + $0x28] sm:$0xff] %v176_v53  ;;  %v154_v54 = vpop.f32.mrf.mxu0 }
  0xa9   :  { %210 = vst [vmem:[%s469_s2 + $0x10] sm:$0xff] %v154_v54  ;;  %v173_v55 = vpop.f32.mrf.mxu1 }
  0xaa   :  { %211 = vst [vmem:[%s469_s2 + $0x18] sm:$0xff] %v173_v55 }
  0xae   :  { %v159_v56 = vpop.f32.mrf.mxu2 }
  0xaf   :  { %214 = vst [vmem:[%s469_s2 + $0x30] sm:$0xff] %v159_v56  ;;  %v178_v57 = vpop.f32.mrf.mxu3 }
  0xb0   :  { %215 = vst [vmem:[%s469_s2 + $0x38] sm:$0xff] %v178_v57 }

</bundles_post_ra>
